<compile_context>
chip_gen: v6e
topology: v6e:2x2x1
jax: 0.10.0
libtpu: 0.0.40
codegen_flags: <defaults>
</compile_context>

<pallas_src>
import math
from functools import partial

import jax
import jax.numpy as jnp
from jax.experimental import pallas as pl
from jax.experimental.pallas import tpu as pltpu

# ----------------------------- toy config ------------------------------------
VOCAB       = 128
TYPE_VOCAB  = 2
MAX_POS     = 64
HIDDEN      = 256                 # multiple of 128 -> lane-dense activations
HEADS       = 2
HEAD_DIM    = HIDDEN // HEADS     # 128 -> per-head slices are whole vregs
INTER       = 512                 # multiple of 128
LAYERS      = 2
NUM_CLASSES = 2
LN_EPS      = 1e-12


# --------------------------- kernel helpers -----------------------------------
def _layernorm(h, gamma, beta):
    mu = jnp.mean(h, axis=-1, keepdims=True)
    var = jnp.mean(jnp.square(h - mu), axis=-1, keepdims=True)
    return (h - mu) * jax.lax.rsqrt(var + LN_EPS) * gamma + beta


def _gelu(y):
    # TODO(synk): HF BERT uses exact erf-GELU; tanh approximation used here.
    c = math.sqrt(2.0 / math.pi)
    return 0.5 * y * (1.0 + jnp.tanh(c * (y + 0.044715 * y * y * y)))


# ------------------------------ fused kernel ----------------------------------
def _encoder_kernel(x_ref, mask_ref, emb_g_ref, emb_b_ref,
                    wqkv_ref, bqkv_ref, wo_ref, bo_ref,
                    ln1_g_ref, ln1_b_ref, w1_ref, b1_ref,
                    w2_ref, b2_ref, ln2_g_ref, ln2_b_ref,
                    o_ref, h_scr, *, heads, head_dim, seq, b_blk):
    """grid = (token-blocks, layers): one step = one layer on one token slab.

    The hidden state lives in h_scr across the (innermost, "arbitrary") layer
    axis; only the last layer writes the (b_blk, H) CLS-row output block.
    """
    l = pl.program_id(1)
    hid = heads * head_dim
    inv_sqrt_d = 1.0 / math.sqrt(head_dim)

    # First layer: embedding LayerNorm (no residual) seeds the resident state.
    @pl.when(l == 0)
    def _():
        h_scr[...] = _layernorm(x_ref[...].astype(jnp.float32),
                                emb_g_ref[...], emb_b_ref[...])

    x = h_scr[...]                                    # (b_blk*seq, H) f32
    xb = x.astype(jnp.bfloat16)

    # Fused QKV projection over the whole token slab: M = b_blk*seq rows per
    # weight fetch; bf16 operands, f32 accumulation on the MXU.
    qkv = (jnp.dot(xb, wqkv_ref[0], preferred_element_type=jnp.float32)
           + bqkv_ref[0])                             # (M, 3H) f32

    wo = wo_ref[0]                                    # (H, H) bf16

    # Self-attention per sequence; the output projection is fused into the
    # head loop (no lane-concatenate of per-head contexts).
    attn_blocks = []
    for b in range(b_blk):
        r0 = b * seq                                  # multiple of 16 rows
        mask_b = mask_ref[b]                          # (1, seq) additive bias
        attn_b = jnp.zeros((seq, hid), jnp.float32)
        for h in range(heads):
            c0 = h * head_dim                         # 128-lane aligned
            qh = qkv[r0:r0 + seq, c0:c0 + head_dim].astype(jnp.bfloat16)
            kh = qkv[r0:r0 + seq, hid + c0:hid + c0 + head_dim].astype(jnp.bfloat16)
            vh = qkv[r0:r0 + seq, 2 * hid + c0:2 * hid + c0 + head_dim].astype(jnp.bfloat16)
            s = jnp.einsum("qd,kd->qk", qh, kh,
                           preferred_element_type=jnp.float32)       # (S, S)
            s = s * inv_sqrt_d + mask_b               # scale in f32 (matches ref)
            s = s - jnp.max(s, axis=-1, keepdims=True)
            p = jnp.exp(s)
            p = p * pl.reciprocal(jnp.sum(p, axis=-1, keepdims=True), approx=True)
            ctx_h = jnp.dot(p.astype(jnp.bfloat16), vh,
                            preferred_element_type=jnp.float32)      # (S, hd)
            # fused per-head output projection (accumulate, no concat)
            attn_b = attn_b + jnp.dot(ctx_h.astype(jnp.bfloat16),
                                      wo[c0:c0 + head_dim, :],
                                      preferred_element_type=jnp.float32)
        attn_blocks.append(attn_b)
    attn = attn_blocks[0] if b_blk == 1 else jnp.concatenate(attn_blocks, axis=0)
    attn = attn + bo_ref[0]
    h1 = _layernorm(attn + x, ln1_g_ref[0], ln1_b_ref[0])

    # ---- feed forward ----
    ff = (jnp.dot(h1.astype(jnp.bfloat16), w1_ref[0],
                  preferred_element_type=jnp.float32) + b1_ref[0])
    ff = _gelu(ff)
    ff2 = (jnp.dot(ff.astype(jnp.bfloat16), w2_ref[0],
                   preferred_element_type=jnp.float32) + b2_ref[0])
    h2 = _layernorm(ff2 + h1, ln2_g_ref[0], ln2_b_ref[0])

    h_scr[...] = h2

    # Only the CLS rows are consumed downstream -> write just (b_blk, H).
    @pl.when(l == pl.num_programs(1) - 1)
    def _():
        if b_blk == 1:
            cls = h2[0:1, :]
        else:
            cls = jnp.concatenate([h2[i * seq:i * seq + 1, :]
                                   for i in range(b_blk)], axis=0)
        o_ref[0] = cls.astype(o_ref.dtype)


def encoder_forward(x, mask_bias, p, *, n_blk=None):
    """Whole frozen BERT encoder (incl. embedding LN) in ONE pallas_call.

    Returns the CLS hidden states, shape (B, HIDDEN).
    NOTE: the layer axis MUST stay innermost and "arbitrary" (resident h_scr).
    """
    M, H = x.shape
    B = mask_bias.shape[0]
    S = M // B
    n_layers = p["wqkv"].shape[0]
    if n_blk is None:
        # 2-way parallel split keeps both v7x TensorCores busy; on v5e/v6e the
        # axis just iterates serially (weights fetched n_blk times per layer).
        n_blk = 2 if B % 2 == 0 else 1
    b_blk = B // n_blk

    def layer_spec(arr):       # stacked per-layer parameter: block = one layer
        return pl.BlockSpec((1,) + tuple(arr.shape[1:]), lambda pb, l: (l, 0, 0))

    in_specs = [
        pl.BlockSpec((b_blk * S, H), lambda pb, l: (pb, 0)),        # token slab
        pl.BlockSpec((b_blk, 1, S), lambda pb, l: (pb, 0, 0)),      # mask bias
        pl.BlockSpec((1, H), lambda pb, l: (0, 0)),                 # emb LN gamma
        pl.BlockSpec((1, H), lambda pb, l: (0, 0)),                 # emb LN beta
        layer_spec(p["wqkv"]), layer_spec(p["bqkv"]),
        layer_spec(p["wo"]),   layer_spec(p["bo"]),
        layer_spec(p["ln1_g"]), layer_spec(p["ln1_b"]),
        layer_spec(p["w1"]),   layer_spec(p["b1"]),
        layer_spec(p["w2"]),   layer_spec(p["b2"]),
        layer_spec(p["ln2_g"]), layer_spec(p["ln2_b"]),
    ]

    cls_out = pl.pallas_call(
        partial(_encoder_kernel, heads=HEADS, head_dim=HEAD_DIM,
                seq=S, b_blk=b_blk),
        out_shape=jax.ShapeDtypeStruct((n_blk, b_blk, H), jnp.float32),
        grid=(n_blk, n_layers),
        in_specs=in_specs,
        out_specs=pl.BlockSpec((1, b_blk, H), lambda pb, l: (pb, 0, 0)),
        scratch_shapes=[pltpu.VMEM((b_blk * S, H), jnp.float32)],
        compiler_params=pltpu.CompilerParams(
            dimension_semantics=("parallel", "arbitrary"),
            vmem_limit_bytes=32 * 1024 * 1024),
    )(x, mask_bias, p["emb_ln_g"], p["emb_ln_b"],
      p["wqkv"], p["bqkv"], p["wo"], p["bo"],
      p["ln1_g"], p["ln1_b"], p["w1"], p["b1"],
      p["w2"], p["b2"], p["ln2_g"], p["ln2_b"])
    return cls_out.reshape(B, H)


# --------------------------- parameters ---------------------------------------
def init_params(key):
    def normal(k, shape):
        return 0.02 * jax.random.normal(k, shape, dtype=jnp.float32)

    keys = iter(jax.random.split(key, 4 + LAYERS * 10))
    params = {
        "word_emb": normal(next(keys), (VOCAB, HIDDEN)),
        "pos_emb":  normal(next(keys), (MAX_POS, HIDDEN)),
        "type_emb": normal(next(keys), (TYPE_VOCAB, HIDDEN)),
        "emb_ln_g": jnp.ones((1, HIDDEN), jnp.float32),
        "emb_ln_b": jnp.zeros((1, HIDDEN), jnp.float32),
        "fc_w":     normal(next(keys), (HIDDEN, NUM_CLASSES)),
        "fc_b":     jnp.zeros((NUM_CLASSES,), jnp.float32),
    }

    wqkv, bqkv, wo, bo = [], [], [], []
    ln1g, ln1b, w1, b1 = [], [], [], []
    w2, b2, ln2g, ln2b = [], [], [], []
    for _ in range(LAYERS):
        wq = normal(next(keys), (HIDDEN, HIDDEN))
        wk = normal(next(keys), (HIDDEN, HIDDEN))
        wv = normal(next(keys), (HIDDEN, HIDDEN))
        # Columns ordered [Q | K | V], per-head contiguous within each; with
        # HEAD_DIM=128 every per-head slice in the kernel is a whole 128-lane
        # vreg group (no masked loads / lane shuffles).
        wqkv.append(jnp.concatenate([wq, wk, wv], axis=1))           # (H, 3H)
        bqkv.append(normal(next(keys), (1, 3 * HIDDEN)))
        wo.append(normal(next(keys), (HIDDEN, HIDDEN)))
        bo.append(normal(next(keys), (1, HIDDEN)))
        ln1g.append(jnp.ones((1, HIDDEN), jnp.float32))
        ln1b.append(jnp.zeros((1, HIDDEN), jnp.float32))
        w1.append(normal(next(keys), (HIDDEN, INTER)))
        b1.append(normal(next(keys), (1, INTER)))
        w2.append(normal(next(keys), (INTER, HIDDEN)))
        b2.append(normal(next(keys), (1, HIDDEN)))
        ln2g.append(jnp.ones((1, HIDDEN), jnp.float32))
        ln2b.append(jnp.zeros((1, HIDDEN), jnp.float32))

    params.update({
        # Frozen weights pre-cast to bf16 (MXU-native); biases/LN stay f32.
        # TODO(synk): int8 weight quant (per-out-channel scales folded into the
        # f32 accumulate) halves weight HBM traffic on v5e/v6e; v7x has no int MXU.
        "wqkv": jnp.stack(wqkv).astype(jnp.bfloat16),
        "bqkv": jnp.stack(bqkv),
        "wo":   jnp.stack(wo).astype(jnp.bfloat16),
        "bo":   jnp.stack(bo),
        "ln1_g": jnp.stack(ln1g), "ln1_b": jnp.stack(ln1b),
        "w1":   jnp.stack(w1).astype(jnp.bfloat16),
        "b1":   jnp.stack(b1),
        "w2":   jnp.stack(w2).astype(jnp.bfloat16),
        "b2":   jnp.stack(b2),
        "ln2_g": jnp.stack(ln2g), "ln2_b": jnp.stack(ln2b),
    })
    return params


# --------------------------- forward pass --------------------------------------
def model_forward(params, input_ids, attention_mask, token_type_ids):
    B, S = input_ids.shape

    # Embedding gathers are glue (plain JAX); embedding LN happens in-kernel.
    emb = (params["word_emb"][input_ids]
           + params["pos_emb"][jnp.arange(S)][None, :, :]
           + params["type_emb"][token_type_ids])
    x = emb.reshape(B * S, HIDDEN).astype(jnp.float32)

    # Extended attention mask: 0 -> -10000 additive bias on key positions.
    mask_bias = ((1.0 - attention_mask.astype(jnp.float32)) * -10000.0
                 ).reshape(B, 1, S)

    cls = encoder_forward(x, mask_bias, params)                      # (B, H)

    # last_hidden_state[:, 0] -> fc (Linear(HIDDEN, 2)); the (B, 2) output is
    # far below lane width, so the classifier stays in plain JAX.
    return cls @ params["fc_w"] + params["fc_b"]                     # (B, 2)


# ------------------------------ main -------------------------------------------
if __name__ == "__main__":
    B, S = 2, 16
    key = jax.random.PRNGKey(0)
    k_par, k_ids = jax.random.split(key)

    params = init_params(k_par)
    input_ids = jax.random.randint(k_ids, (B, S), 0, VOCAB, dtype=jnp.int32)
    attention_mask = jnp.ones((B, S), jnp.int32).at[1, 12:].set(0)   # some padding
    token_type_ids = jnp.zeros((B, S), jnp.int32)

    logits = jax.jit(model_forward)(params, input_ids, attention_mask,
                                    token_type_ids)
    jax.block_until_ready(logits)
    assert logits.shape == (B, NUM_CLASSES) and logits.dtype == jnp.float32
    print("KERNEL_OK")
</pallas_src>

<mosaic_0001>
module attributes {stable_mosaic.version = 11 : i64} {
  func.func @_encoder_kernel(%arg0: i32, %arg1: i32, %arg2: memref<16x256xf32, #tpu.memory_space<vmem>>, %arg3: memref<1x1x16xf32, #tpu.memory_space<vmem>>, %arg4: memref<1x256xf32, #tpu.memory_space<vmem>>, %arg5: memref<1x256xf32, #tpu.memory_space<vmem>>, %arg6: memref<1x256x768xbf16, #tpu.memory_space<vmem>>, %arg7: memref<1x1x768xf32, #tpu.memory_space<vmem>>, %arg8: memref<1x256x256xbf16, #tpu.memory_space<vmem>>, %arg9: memref<1x1x256xf32, #tpu.memory_space<vmem>>, %arg10: memref<1x1x256xf32, #tpu.memory_space<vmem>>, %arg11: memref<1x1x256xf32, #tpu.memory_space<vmem>>, %arg12: memref<1x256x512xbf16, #tpu.memory_space<vmem>>, %arg13: memref<1x1x512xf32, #tpu.memory_space<vmem>>, %arg14: memref<1x512x256xbf16, #tpu.memory_space<vmem>>, %arg15: memref<1x1x256xf32, #tpu.memory_space<vmem>>, %arg16: memref<1x1x256xf32, #tpu.memory_space<vmem>>, %arg17: memref<1x1x256xf32, #tpu.memory_space<vmem>>, %arg18: memref<1x1x256xf32, #tpu.memory_space<vmem>>, %arg19: memref<16x256xf32, #tpu.memory_space<vmem>>) attributes {dimension_semantics = [#tpu.dimension_semantics<parallel>, #tpu.dimension_semantics<arbitrary>], iteration_bounds = array<i64: 2, 2>, scalar_prefetch = 0 : i64, scratch_operands = 1 : i64, tpu.core_type = #tpu.core_type<tc>, window_params = [{transform_indices = @transform_0, window_bounds = array<i64: 16, 256>}, {transform_indices = @transform_1, window_bounds = array<i64: 1, 1, 16>}, {pipeline_mode = #tpu.pipeline_mode<synchronous>, transform_indices = @transform_2, window_bounds = array<i64: 1, 256>}, {pipeline_mode = #tpu.pipeline_mode<synchronous>, transform_indices = @transform_3, window_bounds = array<i64: 1, 256>}, {transform_indices = @transform_4, window_bounds = array<i64: 1, 256, 768>}, {transform_indices = @transform_5, window_bounds = array<i64: 1, 1, 768>}, {transform_indices = @transform_6, window_bounds = array<i64: 1, 256, 256>}, {transform_indices = @transform_7, window_bounds = array<i64: 1, 1, 256>}, {transform_indices = @transform_8, window_bounds = array<i64: 1, 1, 256>}, {transform_indices = @transform_9, window_bounds = array<i64: 1, 1, 256>}, {transform_indices = @transform_10, window_bounds = array<i64: 1, 256, 512>}, {transform_indices = @transform_11, window_bounds = array<i64: 1, 1, 512>}, {transform_indices = @transform_12, window_bounds = array<i64: 1, 512, 256>}, {transform_indices = @transform_13, window_bounds = array<i64: 1, 1, 256>}, {transform_indices = @transform_14, window_bounds = array<i64: 1, 1, 256>}, {transform_indices = @transform_15, window_bounds = array<i64: 1, 1, 256>}, {transform_indices = @transform_16, window_bounds = array<i64: 1, 1, 256>}]} {
    %c0_i32 = arith.constant 0 : i32
    %0 = arith.cmpi eq, %arg1, %c0_i32 : i32
    %1 = arith.extui %0 : i1 to i32
    %c0_i32_0 = arith.constant 0 : i32
    %2 = arith.cmpi ne, %1, %c0_i32_0 : i32
    scf.if %2 {
      %c0_73 = arith.constant 0 : index
      %c0_74 = arith.constant 0 : index
      %162 = vector.load %arg2[%c0_73, %c0_74] : memref<16x256xf32, #tpu.memory_space<vmem>>, vector<16x256xf32>
      %c0_75 = arith.constant 0 : index
      %c0_76 = arith.constant 0 : index
      %163 = vector.load %arg4[%c0_75, %c0_76] : memref<1x256xf32, #tpu.memory_space<vmem>>, vector<1x256xf32>
      %c0_77 = arith.constant 0 : index
      %c0_78 = arith.constant 0 : index
      %164 = vector.load %arg5[%c0_77, %c0_78] : memref<1x256xf32, #tpu.memory_space<vmem>>, vector<1x256xf32>
      %cst_79 = arith.constant dense<0.000000e+00> : vector<16xf32>
      %165 = vector.multi_reduction <add>, %162, %cst_79 [1] : vector<16x256xf32> to vector<16xf32>
      %166 = vector.shape_cast %165 : vector<16xf32> to vector<16x1xf32>
      %cst_80 = arith.constant 2.560000e+02 : f32
      %167 = vector.broadcast %cst_80 : f32 to vector<16x1xf32>
      %168 = arith.divf %166, %167 : vector<16x1xf32>
      %169 = vector.broadcast %168 : vector<16x1xf32> to vector<16x256xf32>
      %170 = arith.subf %162, %169 : vector<16x256xf32>
      %171 = arith.mulf %170, %170 : vector<16x256xf32>
      %cst_81 = arith.constant dense<0.000000e+00> : vector<16xf32>
      %172 = vector.multi_reduction <add>, %171, %cst_81 [1] : vector<16x256xf32> to vector<16xf32>
      %173 = vector.shape_cast %172 : vector<16xf32> to vector<16x1xf32>
      %cst_82 = arith.constant 2.560000e+02 : f32
      %174 = vector.broadcast %cst_82 : f32 to vector<16x1xf32>
      %175 = arith.divf %173, %174 : vector<16x1xf32>
      %176 = vector.broadcast %168 : vector<16x1xf32> to vector<16x256xf32>
      %177 = arith.subf %162, %176 : vector<16x256xf32>
      %cst_83 = arith.constant 9.99999996E-13 : f32
      %178 = vector.broadcast %cst_83 : f32 to vector<16x1xf32>
      %179 = arith.addf %175, %178 : vector<16x1xf32>
      %180 = math.rsqrt %179 : vector<16x1xf32>
      %181 = vector.broadcast %180 : vector<16x1xf32> to vector<16x256xf32>
      %182 = arith.mulf %177, %181 : vector<16x256xf32>
      %183 = vector.broadcast %163 : vector<1x256xf32> to vector<16x256xf32>
      %184 = arith.mulf %182, %183 : vector<16x256xf32>
      %185 = vector.broadcast %164 : vector<1x256xf32> to vector<16x256xf32>
      %186 = arith.addf %184, %185 : vector<16x256xf32>
      %c0_84 = arith.constant 0 : index
      %c0_85 = arith.constant 0 : index
      %187 = vector.load %arg19[%c0_84, %c0_85] : memref<16x256xf32, #tpu.memory_space<vmem>>, vector<16x256xf32>
      tpu.vector_store %arg19[%c0_84, %c0_85], %186 {strides = array<i32>} : memref<16x256xf32, #tpu.memory_space<vmem>>, vector<16x256xf32>,
    } else {
    }
    %c0 = arith.constant 0 : index
    %c0_1 = arith.constant 0 : index
    %3 = vector.load %arg19[%c0, %c0_1] : memref<16x256xf32, #tpu.memory_space<vmem>>, vector<16x256xf32>
    %4 = arith.truncf %3 : vector<16x256xf32> to vector<16x256xbf16>
    %c0_2 = arith.constant 0 : index
    %c0_3 = arith.constant 0 : index
    %c0_4 = arith.constant 0 : index
    %5 = vector.load %arg6[%c0_2, %c0_3, %c0_4] : memref<1x256x768xbf16, #tpu.memory_space<vmem>>, vector<1x256x768xbf16>
    %6 = vector.shape_cast %5 : vector<1x256x768xbf16> to vector<256x768xbf16>
    %cst = arith.constant dense<0.000000e+00> : vector<16x768xf32>
    %7 = tpu.matmul %4, %6, %cst {dimension_numbers = #tpu.dot_dimension_numbers<[1], [0], [0], [1], [0, 0, 1, 1], [], []>} : vector<16x256xbf16>, vector<256x768xbf16>, vector<16x768xf32> -> vector<16x768xf32>
    %c0_5 = arith.constant 0 : index
    %c0_6 = arith.constant 0 : index
    %c0_7 = arith.constant 0 : index
    %8 = vector.load %arg7[%c0_5, %c0_6, %c0_7] : memref<1x1x768xf32, #tpu.memory_space<vmem>>, vector<1x1x768xf32>
    %9 = vector.shape_cast %8 : vector<1x1x768xf32> to vector<1x768xf32>
    %10 = vector.broadcast %9 : vector<1x768xf32> to vector<16x768xf32>
    %11 = arith.addf %7, %10 : vector<16x768xf32>
    %c0_8 = arith.constant 0 : index
    %c0_9 = arith.constant 0 : index
    %c0_10 = arith.constant 0 : index
    %12 = vector.load %arg8[%c0_8, %c0_9, %c0_10] : memref<1x256x256xbf16, #tpu.memory_space<vmem>>, vector<1x256x256xbf16>
    %13 = vector.shape_cast %12 : vector<1x256x256xbf16> to vector<256x256xbf16>
    %c0_11 = arith.constant 0 : index
    %c0_12 = arith.constant 0 : index
    %c0_13 = arith.constant 0 : index
    %14 = vector.load %arg3[%c0_11, %c0_12, %c0_13] : memref<1x1x16xf32, #tpu.memory_space<vmem>>, vector<1x1x16xf32>
    %15 = vector.shape_cast %14 : vector<1x1x16xf32> to vector<1x16xf32>
    %cst_14 = arith.constant 0.000000e+00 : f32
    %16 = vector.broadcast %cst_14 : f32 to vector<16x256xf32>
    %17 = vector.extract_strided_slice %11 {offsets = [0, 0], sizes = [16, 128], strides = [1, 1]} : vector<16x768xf32> to vector<16x128xf32>
    %18 = arith.truncf %17 : vector<16x128xf32> to vector<16x128xbf16>
    %19 = vector.extract_strided_slice %11 {offsets = [0, 256], sizes = [16, 128], strides = [1, 1]} : vector<16x768xf32> to vector<16x128xf32>
    %20 = arith.truncf %19 : vector<16x128xf32> to vector<16x128xbf16>
    %21 = vector.extract_strided_slice %11 {offsets = [0, 512], sizes = [16, 128], strides = [1, 1]} : vector<16x768xf32> to vector<16x128xf32>
    %22 = arith.truncf %21 : vector<16x128xf32> to vector<16x128xbf16>
    "tpu.trace_start"() <{level = 10 : i32, message = "qd,kd->qk"}> : () -> ()
    %cst_15 = arith.constant dense<0.000000e+00> : vector<16x16xf32>
    %23 = tpu.matmul %18, %20, %cst_15 {dimension_numbers = #tpu.dot_dimension_numbers<[1], [1], [0], [0], [0, 0, 1, 0], [], []>} : vector<16x128xbf16>, vector<16x128xbf16>, vector<16x16xf32> -> vector<16x16xf32>
    "tpu.trace_stop"() : () -> ()
    %cst_16 = arith.constant 0.0883883461 : f32
    %24 = vector.broadcast %cst_16 : f32 to vector<16x16xf32>
    %25 = arith.mulf %23, %24 : vector<16x16xf32>
    %26 = vector.broadcast %15 : vector<1x16xf32> to vector<16x16xf32>
    %27 = arith.addf %25, %26 : vector<16x16xf32>
    %cst_17 = arith.constant dense<0xFF800000> : vector<16xf32>
    %28 = vector.multi_reduction <maximumf>, %27, %cst_17 [1] : vector<16x16xf32> to vector<16xf32>
    %29 = vector.shape_cast %28 : vector<16xf32> to vector<16x1xf32>
    %30 = vector.broadcast %29 : vector<16x1xf32> to vector<16x16xf32>
    %31 = arith.subf %27, %30 : vector<16x16xf32>
    %32 = math.exp %31 : vector<16x16xf32>
    %cst_18 = arith.constant dense<0.000000e+00> : vector<16xf32>
    %33 = vector.multi_reduction <add>, %32, %cst_18 [1] : vector<16x16xf32> to vector<16xf32>
    %34 = vector.shape_cast %33 : vector<16xf32> to vector<16x1xf32>
    %35 = tpu.reciprocal %34 {approx = true} : vector<16x1xf32> -> vector<16x1xf32>
    %36 = vector.broadcast %35 : vector<16x1xf32> to vector<16x16xf32>
    %37 = arith.mulf %32, %36 : vector<16x16xf32>
    %38 = arith.truncf %37 : vector<16x16xf32> to vector<16x16xbf16>
    %cst_19 = arith.constant dense<0.000000e+00> : vector<16x128xf32>
    %39 = tpu.matmul %38, %22, %cst_19 {dimension_numbers = #tpu.dot_dimension_numbers<[1], [0], [0], [1], [0, 0, 1, 1], [], []>} : vector<16x16xbf16>, vector<16x128xbf16>, vector<16x128xf32> -> vector<16x128xf32>
    %40 = arith.truncf %39 : vector<16x128xf32> to vector<16x128xbf16>
    %41 = vector.extract_strided_slice %13 {offsets = [0, 0], sizes = [128, 256], strides = [1, 1]} : vector<256x256xbf16> to vector<128x256xbf16>
    %cst_20 = arith.constant dense<0.000000e+00> : vector<16x256xf32>
    %42 = tpu.matmul %40, %41, %cst_20 {dimension_numbers = #tpu.dot_dimension_numbers<[1], [0], [0], [1], [0, 0, 1, 1], [], []>} : vector<16x128xbf16>, vector<128x256xbf16>, vector<16x256xf32> -> vector<16x256xf32>
    %43 = arith.addf %16, %42 : vector<16x256xf32>
    %44 = vector.extract_strided_slice %11 {offsets = [0, 128], sizes = [16, 128], strides = [1, 1]} : vector<16x768xf32> to vector<16x128xf32>
    %45 = arith.truncf %44 : vector<16x128xf32> to vector<16x128xbf16>
    %46 = vector.extract_strided_slice %11 {offsets = [0, 384], sizes = [16, 128], strides = [1, 1]} : vector<16x768xf32> to vector<16x128xf32>
    %47 = arith.truncf %46 : vector<16x128xf32> to vector<16x128xbf16>
    %48 = vector.extract_strided_slice %11 {offsets = [0, 640], sizes = [16, 128], strides = [1, 1]} : vector<16x768xf32> to vector<16x128xf32>
    %49 = arith.truncf %48 : vector<16x128xf32> to vector<16x128xbf16>
    "tpu.trace_start"() <{level = 10 : i32, message = "qd,kd->qk"}> : () -> ()
    %cst_21 = arith.constant dense<0.000000e+00> : vector<16x16xf32>
    %50 = tpu.matmul %45, %47, %cst_21 {dimension_numbers = #tpu.dot_dimension_numbers<[1], [1], [0], [0], [0, 0, 1, 0], [], []>} : vector<16x128xbf16>, vector<16x128xbf16>, vector<16x16xf32> -> vector<16x16xf32>
    "tpu.trace_stop"() : () -> ()
    %cst_22 = arith.constant 0.0883883461 : f32
    %51 = vector.broadcast %cst_22 : f32 to vector<16x16xf32>
    %52 = arith.mulf %50, %51 : vector<16x16xf32>
    %53 = vector.broadcast %15 : vector<1x16xf32> to vector<16x16xf32>
    %54 = arith.addf %52, %53 : vector<16x16xf32>
    %cst_23 = arith.constant dense<0xFF800000> : vector<16xf32>
    %55 = vector.multi_reduction <maximumf>, %54, %cst_23 [1] : vector<16x16xf32> to vector<16xf32>
    %56 = vector.shape_cast %55 : vector<16xf32> to vector<16x1xf32>
    %57 = vector.broadcast %56 : vector<16x1xf32> to vector<16x16xf32>
    %58 = arith.subf %54, %57 : vector<16x16xf32>
    %59 = math.exp %58 : vector<16x16xf32>
    %cst_24 = arith.constant dense<0.000000e+00> : vector<16xf32>
    %60 = vector.multi_reduction <add>, %59, %cst_24 [1] : vector<16x16xf32> to vector<16xf32>
    %61 = vector.shape_cast %60 : vector<16xf32> to vector<16x1xf32>
    %62 = tpu.reciprocal %61 {approx = true} : vector<16x1xf32> -> vector<16x1xf32>
    %63 = vector.broadcast %62 : vector<16x1xf32> to vector<16x16xf32>
    %64 = arith.mulf %59, %63 : vector<16x16xf32>
    %65 = arith.truncf %64 : vector<16x16xf32> to vector<16x16xbf16>
    %cst_25 = arith.constant dense<0.000000e+00> : vector<16x128xf32>
    %66 = tpu.matmul %65, %49, %cst_25 {dimension_numbers = #tpu.dot_dimension_numbers<[1], [0], [0], [1], [0, 0, 1, 1], [], []>} : vector<16x16xbf16>, vector<16x128xbf16>, vector<16x128xf32> -> vector<16x128xf32>
    %67 = arith.truncf %66 : vector<16x128xf32> to vector<16x128xbf16>
    %68 = vector.extract_strided_slice %13 {offsets = [128, 0], sizes = [128, 256], strides = [1, 1]} : vector<256x256xbf16> to vector<128x256xbf16>
    %cst_26 = arith.constant dense<0.000000e+00> : vector<16x256xf32>
    %69 = tpu.matmul %67, %68, %cst_26 {dimension_numbers = #tpu.dot_dimension_numbers<[1], [0], [0], [1], [0, 0, 1, 1], [], []>} : vector<16x128xbf16>, vector<128x256xbf16>, vector<16x256xf32> -> vector<16x256xf32>
    %70 = arith.addf %43, %69 : vector<16x256xf32>
    %c0_27 = arith.constant 0 : index
    %c0_28 = arith.constant 0 : index
    %c0_29 = arith.constant 0 : index
    %71 = vector.load %arg9[%c0_27, %c0_28, %c0_29] : memref<1x1x256xf32, #tpu.memory_space<vmem>>, vector<1x1x256xf32>
    %72 = vector.shape_cast %71 : vector<1x1x256xf32> to vector<1x256xf32>
    %73 = vector.broadcast %72 : vector<1x256xf32> to vector<16x256xf32>
    %74 = arith.addf %70, %73 : vector<16x256xf32>
    %75 = arith.addf %74, %3 : vector<16x256xf32>
    %c0_30 = arith.constant 0 : index
    %c0_31 = arith.constant 0 : index
    %c0_32 = arith.constant 0 : index
    %76 = vector.load %arg10[%c0_30, %c0_31, %c0_32] : memref<1x1x256xf32, #tpu.memory_space<vmem>>, vector<1x1x256xf32>
    %77 = vector.shape_cast %76 : vector<1x1x256xf32> to vector<1x256xf32>
    %c0_33 = arith.constant 0 : index
    %c0_34 = arith.constant 0 : index
    %c0_35 = arith.constant 0 : index
    %78 = vector.load %arg11[%c0_33, %c0_34, %c0_35] : memref<1x1x256xf32, #tpu.memory_space<vmem>>, vector<1x1x256xf32>
    %79 = vector.shape_cast %78 : vector<1x1x256xf32> to vector<1x256xf32>
    %cst_36 = arith.constant dense<0.000000e+00> : vector<16xf32>
    %80 = vector.multi_reduction <add>, %75, %cst_36 [1] : vector<16x256xf32> to vector<16xf32>
    %81 = vector.shape_cast %80 : vector<16xf32> to vector<16x1xf32>
    %cst_37 = arith.constant 2.560000e+02 : f32
    %82 = vector.broadcast %cst_37 : f32 to vector<16x1xf32>
    %83 = arith.divf %81, %82 : vector<16x1xf32>
    %84 = vector.broadcast %83 : vector<16x1xf32> to vector<16x256xf32>
    %85 = arith.subf %75, %84 : vector<16x256xf32>
    %86 = arith.mulf %85, %85 : vector<16x256xf32>
    %cst_38 = arith.constant dense<0.000000e+00> : vector<16xf32>
    %87 = vector.multi_reduction <add>, %86, %cst_38 [1] : vector<16x256xf32> to vector<16xf32>
    %88 = vector.shape_cast %87 : vector<16xf32> to vector<16x1xf32>
    %cst_39 = arith.constant 2.560000e+02 : f32
    %89 = vector.broadcast %cst_39 : f32 to vector<16x1xf32>
    %90 = arith.divf %88, %89 : vector<16x1xf32>
    %91 = vector.broadcast %83 : vector<16x1xf32> to vector<16x256xf32>
    %92 = arith.subf %75, %91 : vector<16x256xf32>
    %cst_40 = arith.constant 9.99999996E-13 : f32
    %93 = vector.broadcast %cst_40 : f32 to vector<16x1xf32>
    %94 = arith.addf %90, %93 : vector<16x1xf32>
    %95 = math.rsqrt %94 : vector<16x1xf32>
    %96 = vector.broadcast %95 : vector<16x1xf32> to vector<16x256xf32>
    %97 = arith.mulf %92, %96 : vector<16x256xf32>
    %98 = vector.broadcast %77 : vector<1x256xf32> to vector<16x256xf32>
    %99 = arith.mulf %97, %98 : vector<16x256xf32>
    %100 = vector.broadcast %79 : vector<1x256xf32> to vector<16x256xf32>
    %101 = arith.addf %99, %100 : vector<16x256xf32>
    %102 = arith.truncf %101 : vector<16x256xf32> to vector<16x256xbf16>
    %c0_41 = arith.constant 0 : index
    %c0_42 = arith.constant 0 : index
    %c0_43 = arith.constant 0 : index
    %103 = vector.load %arg12[%c0_41, %c0_42, %c0_43] : memref<1x256x512xbf16, #tpu.memory_space<vmem>>, vector<1x256x512xbf16>
    %104 = vector.shape_cast %103 : vector<1x256x512xbf16> to vector<256x512xbf16>
    %cst_44 = arith.constant dense<0.000000e+00> : vector<16x512xf32>
    %105 = tpu.matmul %102, %104, %cst_44 {dimension_numbers = #tpu.dot_dimension_numbers<[1], [0], [0], [1], [0, 0, 1, 1], [], []>} : vector<16x256xbf16>, vector<256x512xbf16>, vector<16x512xf32> -> vector<16x512xf32>
    %c0_45 = arith.constant 0 : index
    %c0_46 = arith.constant 0 : index
    %c0_47 = arith.constant 0 : index
    %106 = vector.load %arg13[%c0_45, %c0_46, %c0_47] : memref<1x1x512xf32, #tpu.memory_space<vmem>>, vector<1x1x512xf32>
    %107 = vector.shape_cast %106 : vector<1x1x512xf32> to vector<1x512xf32>
    %108 = vector.broadcast %107 : vector<1x512xf32> to vector<16x512xf32>
    %109 = arith.addf %105, %108 : vector<16x512xf32>
    %cst_48 = arith.constant 5.000000e-01 : f32
    %110 = vector.broadcast %cst_48 : f32 to vector<16x512xf32>
    %111 = arith.mulf %110, %109 : vector<16x512xf32>
    %cst_49 = arith.constant 4.471500e-02 : f32
    %112 = vector.broadcast %cst_49 : f32 to vector<16x512xf32>
    %113 = arith.mulf %112, %109 : vector<16x512xf32>
    %114 = arith.mulf %113, %109 : vector<16x512xf32>
    %115 = arith.mulf %114, %109 : vector<16x512xf32>
    %116 = arith.addf %109, %115 : vector<16x512xf32>
    %cst_50 = arith.constant 0.797884583 : f32
    %117 = vector.broadcast %cst_50 : f32 to vector<16x512xf32>
    %118 = arith.mulf %117, %116 : vector<16x512xf32>
    %119 = math.tanh %118 : vector<16x512xf32>
    %cst_51 = arith.constant 1.000000e+00 : f32
    %120 = vector.broadcast %cst_51 : f32 to vector<16x512xf32>
    %121 = arith.addf %120, %119 : vector<16x512xf32>
    %122 = arith.mulf %111, %121 : vector<16x512xf32>
    %123 = arith.truncf %122 : vector<16x512xf32> to vector<16x512xbf16>
    %c0_52 = arith.constant 0 : index
    %c0_53 = arith.constant 0 : index
    %c0_54 = arith.constant 0 : index
    %124 = vector.load %arg14[%c0_52, %c0_53, %c0_54] : memref<1x512x256xbf16, #tpu.memory_space<vmem>>, vector<1x512x256xbf16>
    %125 = vector.shape_cast %124 : vector<1x512x256xbf16> to vector<512x256xbf16>
    %cst_55 = arith.constant dense<0.000000e+00> : vector<16x256xf32>
    %126 = tpu.matmul %123, %125, %cst_55 {dimension_numbers = #tpu.dot_dimension_numbers<[1], [0], [0], [1], [0, 0, 1, 1], [], []>} : vector<16x512xbf16>, vector<512x256xbf16>, vector<16x256xf32> -> vector<16x256xf32>
    %c0_56 = arith.constant 0 : index
    %c0_57 = arith.constant 0 : index
    %c0_58 = arith.constant 0 : index
    %127 = vector.load %arg15[%c0_56, %c0_57, %c0_58] : memref<1x1x256xf32, #tpu.memory_space<vmem>>, vector<1x1x256xf32>
    %128 = vector.shape_cast %127 : vector<1x1x256xf32> to vector<1x256xf32>
    %129 = vector.broadcast %128 : vector<1x256xf32> to vector<16x256xf32>
    %130 = arith.addf %126, %129 : vector<16x256xf32>
    %131 = arith.addf %130, %101 : vector<16x256xf32>
    %c0_59 = arith.constant 0 : index
    %c0_60 = arith.constant 0 : index
    %c0_61 = arith.constant 0 : index
    %132 = vector.load %arg16[%c0_59, %c0_60, %c0_61] : memref<1x1x256xf32, #tpu.memory_space<vmem>>, vector<1x1x256xf32>
    %133 = vector.shape_cast %132 : vector<1x1x256xf32> to vector<1x256xf32>
    %c0_62 = arith.constant 0 : index
    %c0_63 = arith.constant 0 : index
    %c0_64 = arith.constant 0 : index
    %134 = vector.load %arg17[%c0_62, %c0_63, %c0_64] : memref<1x1x256xf32, #tpu.memory_space<vmem>>, vector<1x1x256xf32>
    %135 = vector.shape_cast %134 : vector<1x1x256xf32> to vector<1x256xf32>
    %cst_65 = arith.constant dense<0.000000e+00> : vector<16xf32>
    %136 = vector.multi_reduction <add>, %131, %cst_65 [1] : vector<16x256xf32> to vector<16xf32>
    %137 = vector.shape_cast %136 : vector<16xf32> to vector<16x1xf32>
    %cst_66 = arith.constant 2.560000e+02 : f32
    %138 = vector.broadcast %cst_66 : f32 to vector<16x1xf32>
    %139 = arith.divf %137, %138 : vector<16x1xf32>
    %140 = vector.broadcast %139 : vector<16x1xf32> to vector<16x256xf32>
    %141 = arith.subf %131, %140 : vector<16x256xf32>
    %142 = arith.mulf %141, %141 : vector<16x256xf32>
    %cst_67 = arith.constant dense<0.000000e+00> : vector<16xf32>
    %143 = vector.multi_reduction <add>, %142, %cst_67 [1] : vector<16x256xf32> to vector<16xf32>
    %144 = vector.shape_cast %143 : vector<16xf32> to vector<16x1xf32>
    %cst_68 = arith.constant 2.560000e+02 : f32
    %145 = vector.broadcast %cst_68 : f32 to vector<16x1xf32>
    %146 = arith.divf %144, %145 : vector<16x1xf32>
    %147 = vector.broadcast %139 : vector<16x1xf32> to vector<16x256xf32>
    %148 = arith.subf %131, %147 : vector<16x256xf32>
    %cst_69 = arith.constant 9.99999996E-13 : f32
    %149 = vector.broadcast %cst_69 : f32 to vector<16x1xf32>
    %150 = arith.addf %146, %149 : vector<16x1xf32>
    %151 = math.rsqrt %150 : vector<16x1xf32>
    %152 = vector.broadcast %151 : vector<16x1xf32> to vector<16x256xf32>
    %153 = arith.mulf %148, %152 : vector<16x256xf32>
    %154 = vector.broadcast %133 : vector<1x256xf32> to vector<16x256xf32>
    %155 = arith.mulf %153, %154 : vector<16x256xf32>
    %156 = vector.broadcast %135 : vector<1x256xf32> to vector<16x256xf32>
    %157 = arith.addf %155, %156 : vector<16x256xf32>
    %c0_70 = arith.constant 0 : index
    %c0_71 = arith.constant 0 : index
    %158 = vector.load %arg19[%c0_70, %c0_71] : memref<16x256xf32, #tpu.memory_space<vmem>>, vector<16x256xf32>
    tpu.vector_store %arg19[%c0_70, %c0_71], %157 {strides = array<i32>} : memref<16x256xf32, #tpu.memory_space<vmem>>, vector<16x256xf32>,
    %c1_i32 = arith.constant 1 : i32
    %159 = arith.cmpi eq, %arg1, %c1_i32 : i32
    %160 = arith.extui %159 : i1 to i32
    %c0_i32_72 = arith.constant 0 : i32
    %161 = arith.cmpi ne, %160, %c0_i32_72 : i32
    scf.if %161 {
      %162 = vector.extract_strided_slice %157 {offsets = [0, 0], sizes = [1, 256], strides = [1, 1]} : vector<16x256xf32> to vector<1x256xf32>
      %c0_73 = arith.constant 0 : index
      %c0_74 = arith.constant 0 : index
      %c0_75 = arith.constant 0 : index
      %163 = vector.load %arg18[%c0_73, %c0_74, %c0_75] : memref<1x1x256xf32, #tpu.memory_space<vmem>>, vector<1x1x256xf32>
      %164 = vector.shape_cast %163 : vector<1x1x256xf32> to vector<1x256xf32>
      %165 = vector.shape_cast %162 : vector<1x256xf32> to vector<1x1x256xf32>
      tpu.vector_store %arg18[%c0_73, %c0_74, %c0_75], %165 {strides = array<i32>} : memref<1x1x256xf32, #tpu.memory_space<vmem>>, vector<1x1x256xf32>,
    } else {
    }
    return
  }
  func.func @transform_0(%arg0: i32, %arg1: i32) -> (i32, i32) {
    %c0_i32 = arith.constant 0 : i32
    %c0_i32_0 = arith.constant 0 : i32
    return %arg0, %c0_i32 : i32, i32
  }
  func.func @transform_1(%arg0: i32, %arg1: i32) -> (i32, i32, i32) {
    %c0_i32 = arith.constant 0 : i32
    %c0_i32_0 = arith.constant 0 : i32
    %c0_i32_1 = arith.constant 0 : i32
    return %arg0, %c0_i32, %c0_i32_0 : i32, i32, i32
  }
  func.func @transform_2(%arg0: i32, %arg1: i32) -> (i32, i32) {
    %c0_i32 = arith.constant 0 : i32
    %c0_i32_0 = arith.constant 0 : i32
    %c0_i32_1 = arith.constant 0 : i32
    return %c0_i32, %c0_i32_0 : i32, i32
  }
  func.func @transform_3(%arg0: i32, %arg1: i32) -> (i32, i32) {
    %c0_i32 = arith.constant 0 : i32
    %c0_i32_0 = arith.constant 0 : i32
    %c0_i32_1 = arith.constant 0 : i32
    return %c0_i32, %c0_i32_0 : i32, i32
  }
  func.func @transform_4(%arg0: i32, %arg1: i32) -> (i32, i32, i32) {
    %c0_i32 = arith.constant 0 : i32
    %c0_i32_0 = arith.constant 0 : i32
    %c0_i32_1 = arith.constant 0 : i32
    return %arg1, %c0_i32, %c0_i32_0 : i32, i32, i32
  }
  func.func @transform_5(%arg0: i32, %arg1: i32) -> (i32, i32, i32) {
    %c0_i32 = arith.constant 0 : i32
    %c0_i32_0 = arith.constant 0 : i32
    %c0_i32_1 = arith.constant 0 : i32
    return %arg1, %c0_i32, %c0_i32_0 : i32, i32, i32
  }
  func.func @transform_6(%arg0: i32, %arg1: i32) -> (i32, i32, i32) {
    %c0_i32 = arith.constant 0 : i32
    %c0_i32_0 = arith.constant 0 : i32
    %c0_i32_1 = arith.constant 0 : i32
    return %arg1, %c0_i32, %c0_i32_0 : i32, i32, i32
  }
  func.func @transform_7(%arg0: i32, %arg1: i32) -> (i32, i32, i32) {
    %c0_i32 = arith.constant 0 : i32
    %c0_i32_0 = arith.constant 0 : i32
    %c0_i32_1 = arith.constant 0 : i32
    return %arg1, %c0_i32, %c0_i32_0 : i32, i32, i32
  }
  func.func @transform_8(%arg0: i32, %arg1: i32) -> (i32, i32, i32) {
    %c0_i32 = arith.constant 0 : i32
    %c0_i32_0 = arith.constant 0 : i32
    %c0_i32_1 = arith.constant 0 : i32
    return %arg1, %c0_i32, %c0_i32_0 : i32, i32, i32
  }
  func.func @transform_9(%arg0: i32, %arg1: i32) -> (i32, i32, i32) {
    %c0_i32 = arith.constant 0 : i32
    %c0_i32_0 = arith.constant 0 : i32
    %c0_i32_1 = arith.constant 0 : i32
    return %arg1, %c0_i32, %c0_i32_0 : i32, i32, i32
  }
  func.func @transform_10(%arg0: i32, %arg1: i32) -> (i32, i32, i32) {
    %c0_i32 = arith.constant 0 : i32
    %c0_i32_0 = arith.constant 0 : i32
    %c0_i32_1 = arith.constant 0 : i32
    return %arg1, %c0_i32, %c0_i32_0 : i32, i32, i32
  }
  func.func @transform_11(%arg0: i32, %arg1: i32) -> (i32, i32, i32) {
    %c0_i32 = arith.constant 0 : i32
    %c0_i32_0 = arith.constant 0 : i32
    %c0_i32_1 = arith.constant 0 : i32
    return %arg1, %c0_i32, %c0_i32_0 : i32, i32, i32
  }
  func.func @transform_12(%arg0: i32, %arg1: i32) -> (i32, i32, i32) {
    %c0_i32 = arith.constant 0 : i32
    %c0_i32_0 = arith.constant 0 : i32
    %c0_i32_1 = arith.constant 0 : i32
    return %arg1, %c0_i32, %c0_i32_0 : i32, i32, i32
  }
  func.func @transform_13(%arg0: i32, %arg1: i32) -> (i32, i32, i32) {
    %c0_i32 = arith.constant 0 : i32
    %c0_i32_0 = arith.constant 0 : i32
    %c0_i32_1 = arith.constant 0 : i32
    return %arg1, %c0_i32, %c0_i32_0 : i32, i32, i32
  }
  func.func @transform_14(%arg0: i32, %arg1: i32) -> (i32, i32, i32) {
    %c0_i32 = arith.constant 0 : i32
    %c0_i32_0 = arith.constant 0 : i32
    %c0_i32_1 = arith.constant 0 : i32
    return %arg1, %c0_i32, %c0_i32_0 : i32, i32, i32
  }
  func.func @transform_15(%arg0: i32, %arg1: i32) -> (i32, i32, i32) {
    %c0_i32 = arith.constant 0 : i32
    %c0_i32_0 = arith.constant 0 : i32
    %c0_i32_1 = arith.constant 0 : i32
    return %arg1, %c0_i32, %c0_i32_0 : i32, i32, i32
  }
  func.func @transform_16(%arg0: i32, %arg1: i32) -> (i32, i32, i32) {
    %c0_i32 = arith.constant 0 : i32
    %c0_i32_0 = arith.constant 0 : i32
    %c0_i32_1 = arith.constant 0 : i32
    return %arg0, %c0_i32, %c0_i32_0 : i32, i32, i32
  }
}

</mosaic_0001>

<bundles_post_ra>
// kernel: model_forward.1
= control target key start
LH: loop header
LB: loop body
LE: loop exit
PB: predicated region body
PF: predicated region fallthrough
CT: control target
= control target key end

     0   :  { %s5369_s0 = inlined_call_operand.vmem [shape: f32[32,256], index: 0, kind: input, shape index: {}]   ;;  %s5370_s1 = inlined_call_operand.vmem [shape: f32[2,1,16], index: 1, kind: input, shape index: {}]   ;;  %s5371_s2 = inlined_call_operand.vmem [shape: f32[1,256], index: 2, kind: input, shape index: {}]   ;;  %s5372_s3 = inlined_call_operand.vmem [shape: f32[1,256], index: 3, kind: input, shape index: {}]   ;;  %s5373_s4 = inlined_call_operand.hbm [shape: bf16[2,256,768], index: 4, kind: input, shape index: {}]   ;;  %s5374_s5 = inlined_call_operand.vmem [shape: f32[2,1,768], index: 5, kind: input, shape index: {}]   ;;  %s5375_s6 = inlined_call_operand.vmem [shape: bf16[2,256,256], index: 6, kind: input, shape index: {}]   ;;  %s5376_s7 = inlined_call_operand.vmem [shape: f32[2,1,256], index: 7, kind: input, shape index: {}]   ;;  %s5377_s8 = inlined_call_operand.vmem [shape: f32[2,1,256], index: 8, kind: input, shape index: {}]   ;;  %s5378_s9 = inlined_call_operand.vmem [shape: f32[2,1,256], index: 9, kind: input, shape index: {}]   ;;  %s5379_s10 = inlined_call_operand.vmem [shape: bf16[2,256,512], index: 10, kind: input, shape index: {}]   ;;  %s5380_s11 = inlined_call_operand.vmem [shape: f32[2,1,512], index: 11, kind: input, shape index: {}]   ;;  %s5381_s12 = inlined_call_operand.hbm [shape: bf16[2,512,256], index: 12, kind: input, shape index: {}]   ;;  %s5382_s13 = inlined_call_operand.vmem [shape: f32[2,1,256], index: 13, kind: input, shape index: {}]   ;;  %s5383_s14 = inlined_call_operand.vmem [shape: f32[2,1,256], index: 14, kind: input, shape index: {}]   ;;  %s5384_s15 = inlined_call_operand.vmem [shape: f32[2,1,256], index: 15, kind: input, shape index: {}]   ;;  %s5385_s16 = inlined_call_operand.vmem [shape: f32[2,1,256], index: 16, kind: output, shape index: {}]  }
   0x1   :  { %5393 = sst [smem:[#allocation19_spill]] %s5369_s0 }
   0x2   :  { %5394 = sst [smem:[#allocation20_spill]] %s5371_s2 }
   0x3   :  { %5395 = sst [smem:[#allocation21_spill]] %s5372_s3 }
   0x4   :  { %5396 = sst [smem:[#allocation22_spill]] %s5373_s4 }
   0x5   :  { %5397 = sst [smem:[#allocation23_spill]] %s5374_s5 }
   0x6   :  { %5398 = sst [smem:[#allocation24_spill]] %s5375_s6 }
   0x7   :  { %5399 = sst [smem:[#allocation25_spill]] %s5377_s8 }
   0x8   :  { %5400 = sst [smem:[#allocation26_spill]] %s5378_s9 }
   0x9   :  { %5401 = sst [smem:[#allocation27_spill]] %s5379_s10 }
   0xa   :  { %5402 = sst [smem:[#allocation28_spill]] %s5380_s11 }
   0xb   :  { %5403 = sst [smem:[#allocation29_spill]] %s5381_s12 }
   0xc   :  { %5404 = sst [smem:[#allocation30_spill]] %s5382_s13 }
   0xd   :  { %5405 = sst [smem:[#allocation31_spill]] %s5383_s14 }
   0xe   :  { %5406 = sst [smem:[#allocation32_spill]] %s5384_s15 }
   0xf   :  { %5407 = sst [smem:[#allocation33_spill]] %s5385_s16 }
  0x10   :  { %21 = vsyncpa [#allocation4], 0 }
  0x11   :  { %23 = vsyncpa [#allocation4 + $0x1], 0 }
  0x12   :  { %24 = vsyncpa [#allocation6], 0 }
  0x13   :  { %26 = vsyncpa [#allocation6 + $0x1], 0  ;;  %s4687_s21 = smov 0   ;;  %s4689_s22 = smov 0  }
  0x14   :  { %s4691_s23 = smov 0   ;;  %s4693_s24 = smov 0  }
  0x15   :  { %s4695_s25 = smov 0   ;;  %s4697_s26 = smov 0  }
  0x16   :  { %s4699_s27 = smov 0   ;;  %s4701_s28 = smov 0  }
  0x17 LB: > { %5408 = sst [smem:[#allocation9_spill]] %s4566_s22  ;;  %s3622_s29 = sadd.s32 4294967295, %s4590_s28   ;;  %s4590_s28 = sphi %s4701_s28, %s32_s28   ;;  %s4586_s27 = sphi %s4699_s27, %s5454_s27   ;;  %s4582_s26 = sphi %s4697_s26, %s5453_s26   ;;  %s4578_s25 = sphi %s4695_s25, %s5452_s25   ;;  %s4574_s24 = sphi %s4693_s24, %s5451_s24   ;;  %s4570_s23 = sphi %s4691_s23, %s5450_s23   ;;  %s4566_s22 = sphi %s4689_s22, %s5449_s22   ;;  %s4562_s21 = sphi %s4687_s21, %s5448_s21  }
  0x18   : > { %5409 = sst [smem:[#allocation10_spill]] %s4570_s23  ;;  %s41_s30 = sadd.s32 1, %s4582_s26 }
  0x19   : > { %5410 = sst [smem:[#allocation11_spill]] %s4582_s26  ;;  %p42_p0 = scmp.ge.s32.totalorder %s41_s30, 2 }
  0x1a   : > { %5411 = sst [smem:[#allocation12_spill]] %s4586_s27  ;;  %s44_s0 = sadd.s32 1, %s4586_s27 }
  0x1b   : > { %5412 = sst [smem:[#allocation13_spill]] %s4590_s28  ;;  %s145_s17 = sadd.s32 1, %s4570_s23 }
  0x1c   : > { %p152_p1 = scmp.ne.s32.totalorder %s4570_s23, %s4566_s22  ;;  %s5456_s30 = smov (%p42_p0, %s41_s30), 0 }
  0x1d   : > { %5413 = sst [smem:[#allocation14_spill]] %s5456_s30  ;;  %s5458_s0 = smov (!%p42_p0, %s44_s0), %s4586_s27 }
  0x1e   : > { %s142_s18 = ssub.s32 %s4582_s26, %s5456_s30  ;;  %p153_p2 = scmp.eq.s32.totalorder %s4590_s28, 0 }
  0x1f   : > { %p46_p3 = scmp.ge.s32.totalorder %s5458_s0, 2  ;;  %p143_p4 = scmp.eq.s32.totalorder %s142_s18, 0 }
  0x20   : > { %p154_p5 = por %p153_p2, %p152_p1  ;;  %p158_p6 = scmp.ne.s32.totalorder %s4566_s22, %s4562_s21 }
  0x21   : > { %s5460_s0 = smov (%p46_p3, %s5458_s0), 0  ;;  %p159_p7 = scmp.eq.s32.totalorder %s3622_s29, 0 }
  0x22   : > { %5414 = sst [smem:[#allocation15_spill]] %s5460_s0  ;;  %p3961_p8 = scmp.lt.s32.totalorder %s4590_s28, 4 }
  0x23   : > { %s4741_s19 = scalar_select %p143_p4, %s4570_s23, %s145_s17  }
  0x24   : > { %s4745_s20 = sand.u32 1, %s4570_s23   ;;  %p4747_p9 = por %p159_p7, %p158_p6 }
  0x25   : > { %5415 = sst [smem:[#allocation16_spill]] %s4741_s19  ;;  %s3946_s30 = smul.u32 768, %s4745_s20 }
  0x26   : > { %p4752_p10 = pnand %p3961_p8, %p154_p5  ;;  %s3947_s21 = smul.u32 12288, %s4582_s26 }
  0x27   : > { %s5418_s4 = sld [smem:[#allocation22_spill]]  ;;  %s520_s0 = scalar_lea.vmem [#allocation3], %s3946_s30 }
  0x28   : > { %s527_s19 = sshll.u32 %s520_s0, 4  ;;  %s517_s23 = scalar_lea.sflag [#allocation4], %s4745_s20  ;;  %s528_s19 = int_to_ptr.vmem [resolvable:$true] %s527_s19 }
  0x29   : > { %p4466_p11 = pneg %p4752_p10  ;;  %s4477_s2 = scalar_lea.vmem %s528_s19, 12288 }
  0x2a   : > { %p4478_p12 = scmp.ne.s32.totalorder %s528_s19, %s4477_s2  ;;  %s4592_s15 = smov [#allocation3]  }
  0x2b   : > { %s4482_s14 = sshll.u32 %s4592_s15, 4  ;;  %s4483_s14 = int_to_ptr.vmem [resolvable:$false] %s4482_s14 }
  0x2c   : > { %p4480_p13 = pnand %p4478_p12, %p4466_p11  ;;  %s4484_s13 = scalar_lea.vmem %s4483_s14, 24576 }
  0x2d   : > { %s526_s29 = scalar_lea.hbm %s5418_s4, %s3947_s21  ;;  %p4485_p1 = scmp.lt.s32.totalorder %s528_s19, %s4483_s14 }
  0x2e   : > { %p4481_p0 = pneg %p4480_p13  ;;  %p4486_p2 = scmp.lt.s32.totalorder %s4484_s13, %s4477_s2 }
  0x30   : > { %p4487_p3 = por %p4486_p2, %p4485_p1 }
  0x32   : > { %p4488_p4 = pnand %p4487_p3, %p4481_p0 }
  0x34   : > { %4491 = shalt.err (!%p4488_p4)
}
  0x35   : > { %s4593_s30 = smov 384   ;;  %s4594_s0 = smov 24  }
  0x36   : > { %3957 = dma.hbm_to_vmem [thread:$0]  (!%p4752_p10), %s526_s29, 12288, %s528_s19, %s517_s23, %s4593_s30, %s4593_s30, %s4594_s0  }
  0x37   : > { %p3630_p5 = scmp.ge.s32.totalorder %s4590_s28, 1  ;;  %p628_p6 = scmp.lt.s32.totalorder %s4590_s28, 5 }
  0x38   : > { %s3627_s15 = sshll.u32 %s4745_s20, 9  ;;  %s3910_s2 = sshll.u32 %s4582_s26, 13 }
  0x39   : > { %p4771_p7 = pnand %p3630_p5, %p628_p6  ;;  %s592_s13 = scalar_lea.vmem [#allocation5], %s3627_s15 }
  0x3a   : > { %s599_s21 = sshll.u32 %s592_s13, 4  ;;  %s5420_s12 = sld [smem:[#allocation29_spill]]  ;;  %s600_s21 = int_to_ptr.vmem [resolvable:$true] %s599_s21 }
  0x3b   : > { %s589_s11 = scalar_lea.sflag [#allocation6], %s4745_s20  ;;  %s4505_s10 = scalar_lea.vmem %s600_s21, 8192 }
  0x3c   : > { %p4506_p8 = scmp.ne.s32.totalorder %s600_s21, %s4505_s10  ;;  %s4595_s23 = smov [#allocation5]  }
  0x3d   : > { %s4510_s19 = sshll.u32 %s4595_s23, 4  ;;  %s4511_s19 = int_to_ptr.vmem [resolvable:$false] %s4510_s19 }
  0x3e   : > { %p4508_p12 = pnand %p4506_p8, %p4466_p11  ;;  %s4512_s29 = scalar_lea.vmem %s4511_s19, 16384 }
  0x3f   : > { %p4513_p0 = scmp.lt.s32.totalorder %s600_s21, %s4511_s19  ;;  %p4514_p1 = scmp.lt.s32.totalorder %s4512_s29, %s4505_s10 }
  0x40   : > { %s598_s4 = scalar_lea.hbm %s5420_s12, %s3910_s2  ;;  %p4509_p13 = pneg %p4508_p12 }
  0x41   : > { %p4515_p2 = por %p4514_p1, %p4513_p0 }
  0x43   : > { %p4516_p3 = pnand %p4515_p2, %p4509_p13 }
  0x45   : > { %4519 = shalt.err (!%p4516_p3)
}
  0x46   : > { %s4596_s30 = smov 128   ;;  %s4597_s0 = smov 8  }
  0x47   : > { %3960 = dma.hbm_to_vmem [thread:$0]  (!%p4752_p10), %s598_s4, 8192, %s600_s21, %s589_s11, %s4596_s30, %s4596_s30, %s4597_s0  }
  0x48   : > { %632 = sbr.rel (%p4771_p7) target bundleno = 3213 (0xc8d), region = 84 }
  0x4d   : > { %s634_s20 = sand.u32 1, %s4566_s22  }
  0x4e   : > { %s3948_s15 = smul.u32 768, %s634_s20  ;;  %s635_s2 = scalar_lea.sflag [#allocation4], %s634_s20 }
  0x50   : > { %s4788_s13 = scalar_lea.vmem [#allocation3], %s3948_s15 }
  0x51   : > { %4553 = dma.done.wait (%p4747_p9), %s635_s2, 12288  }
  0x52   : > { %4555 = vsyncadd (%p4747_p9), %s635_s2, 4294955008  ;;  %s3631_s10 = sshll.u32 %s634_s20, 9  ;;  %s644_s17 = scalar_lea.sflag [#allocation6], %s634_s20 }
  0x53   : > { %s4794_s27 = scalar_lea.vmem [#allocation5], %s3631_s10 }
  0x54   : > { %5421 = sst [smem:[#allocation17_spill]] %s4794_s27 }
  0x55   : > { %4557 = dma.done.wait (%p4747_p9), %s644_s17, 8192  }
  0x56   : > { %4559 = vsyncadd (%p4747_p9), %s644_s17, 4294959104  ;;  %s3632_s4 = sshll.u32 %s4578_s25, 1  ;;  %p758_p10 = scmp.lt.s32.totalorder %s4578_s25, 1 }
  0x57   : > { %p752_p11 = scmp.lt.s32.totalorder %s3632_s4, 3  ;;  %p761_p4 = scmp.lt.s32.totalorder %s4574_s24, 1 }
  0x58   : > { %s5462_s25 = smov (!%p758_p10, %s4578_s25), 1  ;;  %s5422_s16 = sld [smem:[#allocation33_spill]] }
  0x59   : > { %s5464_s4 = smov (!%p752_p11, %s3632_s4), 3  ;;  %s3646_s3 = sshll.u32 %s5462_s25, 1 }
  0x5a   : > { %s3911_s18 = sshll.u32 %s5464_s4, 4  ;;  %s5424_s20 = sld [smem:[#allocation19_spill]] }
  0x5b   : > { %s762_s2 = scalar_select %p761_p4, %s4574_s24, 1 }
  0x5c   : > { %s5425_s6 = sld [smem:[#allocation24_spill]]  ;;  %p3647_p9 = scmp.ne.s32.totalorder %s4574_s24, 0 }
  0x5d   : > { %s3949_s10 = smul.u32 6, %s762_s2  ;;  %s3912_s17 = sshll.u32 %s762_s2, 8 }
  0x5e   : > { %s4814_s29 = scalar_lea.vmem %s5422_s16, %s3646_s3  ;;  %s4825_s11 = sshll.u32 %s762_s2, 1 }
  0x5f   : > { %5423 = sst [smem:[#allocation18_spill]] %s4814_s29  ;;  %s3913_s4 = sshll.u32 %s762_s2, 9 }
  0x60   : > { %s756_s15 = scalar_lea.vmem %s5424_s20, %s3911_s18  ;;  %s5426_s5 = sld [smem:[#allocation23_spill]] }
  0x61   : > { %s3642_s14 = sshll.u32 %s762_s2, 2  ;;  %s5429_s16 = sld [smem:[#allocation27_spill]] }
  0x62   : > { %s4823_s22 = scalar_lea.vmem %s5425_s6, %s3912_s17  ;;  %s5430_s29 = sld [smem:[#allocation28_spill]] }
  0x63   : > { %s5431_s12 = sld [smem:[#allocation30_spill]] }
  0x64   : > { %s5432_s0 = sld [smem:[#allocation31_spill]] }
  0x65   : > { %s5433_s9 = sld [smem:[#allocation32_spill]] }
  0x66   : > { %s4830_s3 = scalar_lea.vmem %s5426_s5, %s3949_s10  ;;  %s5434_s8 = sld [smem:[#allocation20_spill]] (!%p3647_p9) }
  0x67   : > { %s4847_s28 = scalar_lea.vmem %s5429_s16, %s3913_s4  ;;  %811 = sbr.rel (%p3647_p9) target bundleno = 424 (0x1a8), region = 96 }
  0x68   : > { %s4852_s18 = scalar_lea.vmem %s5430_s29, %s3642_s14  ;;  %s5435_s21 = sld [smem:[#allocation21_spill]] (!%p3647_p9) }
  0x69   : > { %s794_s26 = scalar_lea.vmem %s5431_s12, %s4825_s11 }
  0x6a   : > { %s798_s20 = scalar_lea.vmem %s5432_s0, %s4825_s11 }
  0x6b   : > { %s802_s27 = scalar_lea.vmem %s5433_s9, %s4825_s11 }
  0x6c   : > { %v812_v0 = vld [vmem:[%s756_s15] sm:$0xff]  ;;  %v813_v1 = vld [vmem:[%s756_s15 + $0x8] sm:$0xff]  ;;  %v814_v2 = vld [vmem:[%s756_s15 + $0x10] sm:$0xff]  ;;  %v852_v24 = vlaneseq }
  0x6d   : > { %v818_v3 = vadd.f32 %v813_v1, %v812_v0  ;;  %v815_v4 = vld [vmem:[%s756_s15 + $0x18] sm:$0xff]  ;;  %v816_v30 = vld [vmem:[%s5434_s8] sm:$0x3] }
  0x6e   : > { %v821_v5 = vadd.f32 %v815_v4, %v814_v2  ;;  %v853_v27 = vshrl.u32 %v852_v24, 7  ;;  %v817_v31 = vld [vmem:[%s5435_s21] sm:$0x3] }
  0x6f   : > { %819 = vadd.xlane.f32.xlu0 %v818_v3 }
  0x70   : > { %v854_v28 = vsub.s32 0, %v853_v27  ;;  %v858_v29 = vsub.s32 1, %v853_v27 }
  0x72   : > { %v855_v32 = vrot.slane %v816_v30, %v854_v28  ;;  %v859_v33 = vrot.slane %v816_v30, %v858_v29  ;;  %v870_v35 = vrot.slane %v817_v31, %v854_v28  ;;  %v874_v36 = vrot.slane %v817_v31, %v858_v29 }
  0x73   : > { %822 = vadd.xlane.f32.xlu0 %v821_v5 }
  0xf8   : > { %v820_v6 = vpop.xlane.xlu0 %819 }
  0xf9   : > { %v825_v7 = vmul.f32 0.00390625, %v820_v6 }
  0xfb   : > { %v827_v8 = vsub.f32 %v812_v0, %v825_v7  ;;  %v828_v9 = vsub.f32 %v813_v1, %v825_v7 }
  0xfc   : > { %v823_v10 = vpop.xlane.xlu0 %822 }
  0xfd   : > { %v826_v11 = vmul.f32 0.00390625, %v823_v10  ;;  %v831_v12 = vmul.f32 %v827_v8, %v827_v8  ;;  %v832_v13 = vmul.f32 %v828_v9, %v828_v9 }
  0xff   : > { %v829_v14 = vsub.f32 %v814_v2, %v826_v11  ;;  %v830_v15 = vsub.f32 %v815_v4, %v826_v11  ;;  %v835_v16 = vadd.f32 %v832_v13, %v831_v12 }
 0x101   : > { %836 = vadd.xlane.f32.xlu1 %v835_v16  ;;  %v833_v17 = vmul.f32 %v829_v14, %v829_v14  ;;  %v834_v18 = vmul.f32 %v830_v15, %v830_v15 }
 0x103   : > { %v838_v19 = vadd.f32 %v834_v18, %v833_v17 }
 0x105   : > { %839 = vadd.xlane.f32.xlu1 %v838_v19 }
 0x18a   : > { %v837_v20 = vpop.xlane.xlu1 %836 }
 0x18b   : > { %v841_v21 = vmul.f32 0.00390625, %v837_v20 }
 0x18d   : > { %v843_v22 = vadd.f32 1e-12, %v841_v21 }
 0x18e   : > { %v840_v23 = vpop.xlane.xlu1 %839 }
 0x18f   : > { %4034 = vrsqrt.f32 %v843_v22  ;;  %v842_v25 = vmul.f32 0.00390625, %v840_v23 }
 0x191   : > { %v844_v26 = vadd.f32 1e-12, %v842_v25 }
 0x193   : > { %4036 = vrsqrt.f32 %v844_v26 }
 0x19c   : > { %v4035_v34 = vpop.eup %4034 }
 0x19d   : > { %v847_v37 = vmul.f32 %v4035_v34, %v827_v8  ;;  %v848_v38 = vmul.f32 %v4035_v34, %v828_v9 }
 0x19f   : > { %v862_v39 = vmul.f32 %v855_v32, %v847_v37  ;;  %v863_v40 = vmul.f32 %v859_v33, %v848_v38 }
 0x1a0   : > { %v4037_v41 = vpop.eup %4036 }
 0x1a1   : > { %v877_v42 = vadd.f32 %v870_v35, %v862_v39  ;;  %v878_v43 = vadd.f32 %v874_v36, %v863_v40  ;;  %v849_v44 = vmul.f32 %v4037_v41, %v829_v14  ;;  %v850_v45 = vmul.f32 %v4037_v41, %v830_v15 }
 0x1a3   : > { %881 = vst [vmem:[#allocation2 + $0x10] sm:$0xff] %v877_v42  ;;  %882 = vst [vmem:[#allocation2] sm:$0xff] %v878_v43  ;;  %v864_v46 = vmul.f32 %v855_v32, %v849_v44  ;;  %v865_v47 = vmul.f32 %v859_v33, %v850_v45 }
 0x1a5   : > { %v879_v48 = vadd.f32 %v870_v35, %v864_v46  ;;  %v880_v49 = vadd.f32 %v874_v36, %v865_v47 }
 0x1a7   : > { %883 = vst [vmem:[#allocation2 + $0x18] sm:$0xff] %v879_v48  ;;  %884 = vst [vmem:[#allocation2 + $0x8] sm:$0xff] %v880_v49 }
 0x1a8 PF: > { %v4038_v50 = vld [vmem:[%s4788_s13 + $0x15c] ss:$24 sps:$4 sm:$0xff]   ;;  %v4040_v51 = vld [vmem:[%s4788_s13 + $0x158] ss:$24 sps:$4 sm:$0xff]   ;;  %v4044_v54 = vld [vmem:[%s4788_s13 + $0x12c] ss:$24 sps:$4 sm:$0xff]   ;;  %s5437_s19 = scalar_lea.vmem %s5376_s7, %s4825_s11 }
 0x1a9   : > { %1542 = vmatprep.subr.bf16.mxu1 %v4038_v50  ;;  %v4041_v52 = vld [vmem:[%s4788_s13 + $0x154] ss:$24 sps:$4 sm:$0xff]   ;;  %v4043_v53 = vld [vmem:[%s4788_s13 + $0x150] ss:$24 sps:$4 sm:$0xff]   ;;  %v4047_v56 = vld [vmem:[%s4788_s13 + $0x124] ss:$24 sps:$4 sm:$0xff]  }
 0x1aa   : > { %1543 = vmatpush1.bf16.msra.mxu1 %v4040_v51  ;;  %v4046_v55 = vld [vmem:[%s4788_s13 + $0x128] ss:$24 sps:$4 sm:$0xff]   ;;  %1499 = vmatprep.subr.bf16.mxu0 %v4041_v52  ;;  %v4050_v58 = vld [vmem:[%s4788_s13 + $0xfc] ss:$24 sps:$4 sm:$0xff]   ;;  %v4052_v59 = vld [vmem:[%s4788_s13 + $0xf8] ss:$24 sps:$4 sm:$0xff]  }
 0x1ab   : > { %1500 = vmatpush1.bf16.msra.mxu0 %v4043_v53  ;;  %1544 = vmatprep.subr.bf16.mxu1 %v4044_v54  ;;  %v4049_v57 = vld [vmem:[%s4788_s13 + $0x120] ss:$24 sps:$4 sm:$0xff]   ;;  %v4053_v60 = vld [vmem:[%s4788_s13 + $0xf4] ss:$24 sps:$4 sm:$0xff]   ;;  %v4055_v62 = vld [vmem:[%s4788_s13 + $0xf0] ss:$24 sps:$4 sm:$0xff]  }
 0x1ac   : > { %1501 = vmatprep.subr.bf16.mxu0 %v4047_v56  ;;  %v4056_v61 = vld [vmem:[%s4788_s13 + $0xcc] ss:$24 sps:$4 sm:$0xff]   ;;  %v4058_v0 = vld [vmem:[%s4788_s13 + $0xc8] ss:$24 sps:$4 sm:$0xff]   ;;  %v4062_v1 = vld [vmem:[%s4788_s13 + $0x9c] ss:$24 sps:$4 sm:$0xff]  }
 0x1ad   : > { %v4059_v63 = vld [vmem:[%s4788_s13 + $0xc4] ss:$24 sps:$4 sm:$0xff]   ;;  %v4061_v2 = vld [vmem:[%s4788_s13 + $0xc0] ss:$24 sps:$4 sm:$0xff]   ;;  %v4065_v3 = vld [vmem:[%s4788_s13 + $0x94] ss:$24 sps:$4 sm:$0xff]  }
 0x1ae   : > { %1545 = vmatpush1.bf16.msra.mxu1 %v4046_v55  ;;  %v4064_v4 = vld [vmem:[%s4788_s13 + $0x98] ss:$24 sps:$4 sm:$0xff]   ;;  %v4068_v5 = vld [vmem:[%s4788_s13 + $0x6c] ss:$24 sps:$4 sm:$0xff]   ;;  %v4070_v8 = vld [vmem:[%s4788_s13 + $0x68] ss:$24 sps:$4 sm:$0xff]  }
 0x1af   : > { %1546 = vmatprep.subr.bf16.mxu1 %v4050_v58  ;;  %1502 = vmatpush1.bf16.msra.mxu0 %v4049_v57  ;;  %v4067_v6 = vld [vmem:[%s4788_s13 + $0x90] ss:$24 sps:$4 sm:$0xff]   ;;  %v4071_v7 = vld [vmem:[%s4788_s13 + $0x64] ss:$24 sps:$4 sm:$0xff]   ;;  %v4073_v10 = vld [vmem:[%s4788_s13 + $0x60] ss:$24 sps:$4 sm:$0xff]   ;;  %v989_v57 = vlaneseq }
 0x1b0   : > { %1503 = vmatprep.subr.bf16.mxu0 %v4053_v60  ;;  %v4074_v9 = vld [vmem:[%s4788_s13 + $0x3c] ss:$24 sps:$4 sm:$0xff]   ;;  %v4076_v12 = vld [vmem:[%s4788_s13 + $0x38] ss:$24 sps:$4 sm:$0xff]   ;;  %v4080_v13 = vld [vmem:[%s4788_s13 + $0xc] ss:$24 sps:$4 sm:$0xff]  }
 0x1b1   : > { %v4077_v11 = vld [vmem:[%s4788_s13 + $0x34] ss:$24 sps:$4 sm:$0xff]   ;;  %v4079_v14 = vld [vmem:[%s4788_s13 + $0x30] ss:$24 sps:$4 sm:$0xff]   ;;  %v4083_v15 = vld [vmem:[%s4788_s13 + $0x4] ss:$24 sps:$4 sm:$0xff]  }
 0x1b2   : > { %1547 = vmatpush1.bf16.msra.mxu1 %v4052_v59  ;;  %v4082_v16 = vld [vmem:[%s4788_s13 + $0x8] ss:$24 sps:$4 sm:$0xff]   ;;  %v4086_v17 = vld [vmem:[%s4788_s13 + $0x2dc] ss:$24 sps:$4 sm:$0xff]   ;;  %v4088_v20 = vld [vmem:[%s4788_s13 + $0x2d8] ss:$24 sps:$4 sm:$0xff]  }
 0x1b3   : > { %1548 = vmatprep.subr.bf16.mxu1 %v4056_v61  ;;  %1504 = vmatpush1.bf16.msra.mxu0 %v4055_v62  ;;  %v4085_v18 = vld [vmem:[%s4788_s13] ss:$24 sps:$4 sm:$0xff]   ;;  %v4089_v19 = vld [vmem:[%s4788_s13 + $0x2d4] ss:$24 sps:$4 sm:$0xff]   ;;  %v4091_v22 = vld [vmem:[%s4788_s13 + $0x2d0] ss:$24 sps:$4 sm:$0xff]  }
 0x1b4   : > { %1505 = vmatprep.subr.bf16.mxu0 %v4059_v63  ;;  %v4092_v21 = vld [vmem:[%s4788_s13 + $0x2ac] ss:$24 sps:$4 sm:$0xff]   ;;  %v4094_v24 = vld [vmem:[%s4788_s13 + $0x2a8] ss:$24 sps:$4 sm:$0xff]   ;;  %v4098_v25 = vld [vmem:[%s4788_s13 + $0x27c] ss:$24 sps:$4 sm:$0xff]  }
 0x1b5   : > { %v4095_v23 = vld [vmem:[%s4788_s13 + $0x2a4] ss:$24 sps:$4 sm:$0xff]   ;;  %v4097_v26 = vld [vmem:[%s4788_s13 + $0x2a0] ss:$24 sps:$4 sm:$0xff]   ;;  %v4101_v27 = vld [vmem:[%s4788_s13 + $0x274] ss:$24 sps:$4 sm:$0xff]  }
 0x1b6   : > { %1549 = vmatpush1.bf16.msra.mxu1 %v4058_v0  ;;  %v4100_v28 = vld [vmem:[%s4788_s13 + $0x278] ss:$24 sps:$4 sm:$0xff]   ;;  %v4104_v29 = vld [vmem:[%s4788_s13 + $0x24c] ss:$24 sps:$4 sm:$0xff]   ;;  %v4106_v31 = vld [vmem:[%s4788_s13 + $0x248] ss:$24 sps:$4 sm:$0xff]  }
 0x1b7   : > { %1550 = vmatprep.subr.bf16.mxu1 %v4062_v1  ;;  %1506 = vmatpush1.bf16.msra.mxu0 %v4061_v2  ;;  %v4103_v30 = vld [vmem:[%s4788_s13 + $0x270] ss:$24 sps:$4 sm:$0xff]   ;;  %v4107_v32 = vld [vmem:[%s4788_s13 + $0x244] ss:$24 sps:$4 sm:$0xff]   ;;  %v4109_v34 = vld [vmem:[%s4788_s13 + $0x240] ss:$24 sps:$4 sm:$0xff]  }
 0x1b8   : > { %1507 = vmatprep.subr.bf16.mxu0 %v4065_v3  ;;  %v886_v33 = vld [vmem:[#allocation2] sm:$0xff]  ;;  %v4110_v35 = vld [vmem:[%s4788_s13 + $0x21c] ss:$24 sps:$4 sm:$0xff]   ;;  %v888_v36 = vld [vmem:[#allocation2 + $0x8] sm:$0xff]  ;;  %v4598_v56 = vmov 0.0   ;;  %vm4599_vm0 = vmmov 0  }
 0x1b9   : > { %v4113_v37 = vld [vmem:[%s4788_s13 + $0x214] ss:$24 sps:$4 sm:$0xff]   ;;  %v890_v38 = vpack.c.bf16 %v888_v36, %v886_v33  ;;  %v4112_v39 = vld [vmem:[%s4788_s13 + $0x218] ss:$24 sps:$4 sm:$0xff]   ;;  %v4119_v42 = vld [vmem:[%s4788_s13 + $0x1e4] ss:$24 sps:$4 sm:$0xff]  }
 0x1ba   : > { %1551 = vmatpush1.bf16.msra.mxu1 %v4064_v4  ;;  %v4116_v40 = vld [vmem:[%s4788_s13 + $0x1ec] ss:$24 sps:$4 sm:$0xff]   ;;  %v4115_v41 = vld [vmem:[%s4788_s13 + $0x210] ss:$24 sps:$4 sm:$0xff]   ;;  %v4122_v44 = vld [vmem:[%s4788_s13 + $0x1bc] ss:$24 sps:$4 sm:$0xff]  }
 0x1bb   : > { %1552 = vmatprep.subr.bf16.mxu1 %v4068_v5  ;;  %1508 = vmatpush1.bf16.msra.mxu0 %v4067_v6  ;;  %v4118_v43 = vld [vmem:[%s4788_s13 + $0x1e8] ss:$24 sps:$4 sm:$0xff]   ;;  %v4125_v46 = vld [vmem:[%s4788_s13 + $0x1b4] ss:$24 sps:$4 sm:$0xff]   ;;  %v4124_v47 = vld [vmem:[%s4788_s13 + $0x1b8] ss:$24 sps:$4 sm:$0xff]  }
 0x1bc   : > { %1509 = vmatprep.subr.bf16.mxu0 %v4071_v7  ;;  %1574 = vmatprep.mubr.bf16.mxu1 %v890_v38  ;;  %v4121_v45 = vld [vmem:[%s4788_s13 + $0x1e0] ss:$24 sps:$4 sm:$0xff]   ;;  %v4128_v48 = vld [vmem:[%s4788_s13 + $0x18c] ss:$24 sps:$4 sm:$0xff]   ;;  %v4127_v49 = vld [vmem:[%s4788_s13 + $0x1b0] ss:$24 sps:$4 sm:$0xff]  }
 0x1bd   : > { %1531 = vmatprep.mubr.bf16.mxu0 %v890_v38  ;;  %v4131_v50 = vld [vmem:[%s4788_s13 + $0x184] ss:$24 sps:$4 sm:$0xff]   ;;  %v4130_v51 = vld [vmem:[%s4788_s13 + $0x188] ss:$24 sps:$4 sm:$0xff]   ;;  %v4936_v52 = vld [vmem:[#allocation2 + $0x10] sm:$0xff]  ;;  %v4951_v58 = vshrl.u32 %v989_v57, 7 }
 0x1be   : > { %1553 = vmatpush1.bf16.msra.mxu1 %v4070_v8  ;;  %v4938_v53 = vld [vmem:[#allocation2 + $0x18] sm:$0xff]  ;;  %v4955_v60 = vld [vmem:[%s4830_s3] sm:$0x3f]  ;;  %s5436_s3 = scalar_lea.vmem %s5370_s1, %s5462_s25  ;;  %vm1715_vm1 = vcmask 130048   ;;  %s5439_s17 = sld [smem:[#allocation25_spill]] }
 0x1bf   : > { %1554 = vmatprep.subr.bf16.mxu1 %v4074_v9  ;;  %1510 = vmatpush1.bf16.msra.mxu0 %v4073_v10  ;;  %v4133_v54 = vld [vmem:[%s4788_s13 + $0x180] ss:$24 sps:$4 sm:$0xff]   ;;  %v4943_v55 = vpack.c.bf16 %v4938_v53, %v4936_v52  ;;  %v999_v59 = vsub.s32 2, %v4951_v58  ;;  %v4961_v63 = vsub.s32 0, %v4951_v58  ;;  %v4172_v36 = vld [vmem:[%s4788_s13 + $0x224] ss:$24 sps:$4 sm:$0xff]  }
 0x1c0   : > { %1511 = vmatprep.subr.bf16.mxu0 %v4077_v11  ;;  %v4164_v33 = vld [vmem:[%s4788_s13 + $0x280] ss:$24 sps:$4 sm:$0xff]   ;;  %s5441_s23 = sld [smem:[#allocation26_spill]]  ;;  %p3907_p5 = scmp.ne.s32.totalorder %s4574_s24, 1 }
 0x1c1   : > { %v1000_v62 = vrot.slane %v4955_v60, %v999_v59  ;;  %v992_v6 = vrot.slane %v4955_v60, %v4961_v63 }
 0x1c2   : > { %1555 = vmatpush1.bf16.msra.mxu1 %v4076_v12  ;;  %v4134_v12 = vld [vmem:[%s4788_s13 + $0x160] ss:$24 sps:$4 sm:$0xff]  }
 0x1c3   : > { %1556 = vmatprep.subr.bf16.mxu1 %v4080_v13  ;;  %1512 = vmatpush1.bf16.msra.mxu0 %v4079_v14  ;;  %v4136_v13 = vld [vmem:[%s4788_s13 + $0x164] ss:$24 sps:$4 sm:$0xff]   ;;  %v4139_v14 = vld [vmem:[%s4788_s13 + $0x134] ss:$24 sps:$4 sm:$0xff]  }
 0x1c4   : > { %1513 = vmatprep.subr.bf16.mxu0 %v4083_v15  ;;  %v4137_v15 = vld [vmem:[%s4788_s13 + $0x130] ss:$24 sps:$4 sm:$0xff]   ;;  %s5440_s4 = scalar_lea.vmem %s5439_s17, %s4825_s11 }
 0x1c6   : > { %1557 = vmatpush1.bf16.msra.mxu1 %v4082_v16  ;;  %v4142_v16 = vld [vmem:[%s4788_s13 + $0x104] ss:$24 sps:$4 sm:$0xff]   ;;  %s5442_s12 = scalar_lea.vmem %s5441_s23, %s4825_s11 }
 0x1c7   : > { %1558 = vmatprep.subr.bf16.mxu1 %v4086_v17  ;;  %1514 = vmatpush1.bf16.msra.mxu0 %v4085_v18  ;;  %v4140_v17 = vld [vmem:[%s4788_s13 + $0x100] ss:$24 sps:$4 sm:$0xff]   ;;  %v4145_v18 = vld [vmem:[%s4788_s13 + $0xd4] ss:$24 sps:$4 sm:$0xff]  }
 0x1c8   : > { %1515 = vmatprep.subr.bf16.mxu0 %v4089_v19  ;;  %v4143_v19 = vld [vmem:[%s4788_s13 + $0xd0] ss:$24 sps:$4 sm:$0xff]  }
 0x1ca   : > { %1559 = vmatpush2.bf16.msra.mxu1 %v4088_v20  ;;  %v4148_v20 = vld [vmem:[%s4788_s13 + $0xa4] ss:$24 sps:$4 sm:$0xff]  }
 0x1cb   : > { %1560 = vmatprep.subr.bf16.mxu1 %v4092_v21  ;;  %1516 = vmatpush2.bf16.msra.mxu0 %v4091_v22  ;;  %v4146_v21 = vld [vmem:[%s4788_s13 + $0xa0] ss:$24 sps:$4 sm:$0xff]   ;;  %v4151_v22 = vld [vmem:[%s4788_s13 + $0x74] ss:$24 sps:$4 sm:$0xff]  }
 0x1cc   : > { %1517 = vmatprep.subr.bf16.mxu0 %v4095_v23  ;;  %v4149_v23 = vld [vmem:[%s4788_s13 + $0x70] ss:$24 sps:$4 sm:$0xff]  }
 0x1ce   : > { %1561 = vmatpush2.bf16.msra.mxu1 %v4094_v24  ;;  %v4154_v24 = vld [vmem:[%s4788_s13 + $0x44] ss:$24 sps:$4 sm:$0xff]  }
 0x1cf   : > { %1562 = vmatprep.subr.bf16.mxu1 %v4098_v25  ;;  %1518 = vmatpush2.bf16.msra.mxu0 %v4097_v26  ;;  %v4152_v25 = vld [vmem:[%s4788_s13 + $0x40] ss:$24 sps:$4 sm:$0xff]   ;;  %v4157_v26 = vld [vmem:[%s4788_s13 + $0x14] ss:$24 sps:$4 sm:$0xff]  }
 0x1d0   : > { %1519 = vmatprep.subr.bf16.mxu0 %v4101_v27  ;;  %v4155_v27 = vld [vmem:[%s4788_s13 + $0x10] ss:$24 sps:$4 sm:$0xff]  }
 0x1d2   : > { %1563 = vmatpush2.bf16.msra.mxu1 %v4100_v28  ;;  %v4160_v28 = vld [vmem:[%s4788_s13 + $0x2e4] ss:$24 sps:$4 sm:$0xff]  }
 0x1d3   : > { %1564 = vmatprep.subr.bf16.mxu1 %v4104_v29  ;;  %1520 = vmatpush2.bf16.msra.mxu0 %v4103_v30  ;;  %v4158_v29 = vld [vmem:[%s4788_s13 + $0x2e0] ss:$24 sps:$4 sm:$0xff]   ;;  %v4163_v30 = vld [vmem:[%s4788_s13 + $0x2b4] ss:$24 sps:$4 sm:$0xff]  }
 0x1d4   : > { %1521 = vmatprep.subr.bf16.mxu0 %v4107_v32  ;;  %v4166_v32 = vld [vmem:[%s4788_s13 + $0x284] ss:$24 sps:$4 sm:$0xff]  }
 0x1d6   : > { %1565 = vmatpush2.bf16.msra.mxu1 %v4106_v31  ;;  %v4161_v31 = vld [vmem:[%s4788_s13 + $0x2b0] ss:$24 sps:$4 sm:$0xff]  }
 0x1d7   : > { %1566 = vmatprep.subr.bf16.mxu1 %v4110_v35  ;;  %1522 = vmatpush2.bf16.msra.mxu0 %v4109_v34  ;;  %v4169_v34 = vld [vmem:[%s4788_s13 + $0x254] ss:$24 sps:$4 sm:$0xff]   ;;  %v4167_v35 = vld [vmem:[%s4788_s13 + $0x250] ss:$24 sps:$4 sm:$0xff]  }
 0x1d8   : > { %1523 = vmatprep.subr.bf16.mxu0 %v4113_v37  ;;  %v4170_v37 = vld [vmem:[%s4788_s13 + $0x220] ss:$24 sps:$4 sm:$0xff]  }
 0x1da   : > { %1567 = vmatpush2.bf16.msra.mxu1 %v4112_v39  ;;  %v4173_v39 = vld [vmem:[%s4788_s13 + $0x1f0] ss:$24 sps:$4 sm:$0xff]  }
 0x1db   : > { %1568 = vmatprep.subr.bf16.mxu1 %v4116_v40  ;;  %1524 = vmatpush2.bf16.msra.mxu0 %v4115_v41  ;;  %v4178_v40 = vld [vmem:[%s4788_s13 + $0x1c4] ss:$24 sps:$4 sm:$0xff]   ;;  %v4176_v41 = vld [vmem:[%s4788_s13 + $0x1c0] ss:$24 sps:$4 sm:$0xff]  }
 0x1dc   : > { %1525 = vmatprep.subr.bf16.mxu0 %v4119_v42  ;;  %v4181_v42 = vld [vmem:[%s4788_s13 + $0x194] ss:$24 sps:$4 sm:$0xff]  }
 0x1de   : > { %1569 = vmatpush2.bf16.msra.mxu1 %v4118_v43  ;;  %v4179_v43 = vld [vmem:[%s4788_s13 + $0x190] ss:$24 sps:$4 sm:$0xff]  }
 0x1df   : > { %1570 = vmatprep.subr.bf16.mxu1 %v4122_v44  ;;  %1526 = vmatpush2.bf16.msra.mxu0 %v4121_v45 }
 0x1e0   : > { %1527 = vmatprep.subr.bf16.mxu0 %v4125_v46  ;;  %v5012_v46 = vld [vmem:[%s5436_s3] ss:$0 sm:$0xff] }
 0x1e2   : > { %1571 = vmatpush2.bf16.msra.mxu1 %v4124_v47 }
 0x1e3   : > { %1572 = vmatprep.subr.bf16.mxu1 %v4128_v48  ;;  %1528 = vmatpush2.bf16.msra.mxu0 %v4127_v49 }
 0x1e4   : > { %1529 = vmatprep.subr.bf16.mxu0 %v4131_v50 }
 0x1e6   : > { %1573 = vmatpush2.bf16.msra.mxu1 %v4130_v51 }
 0x1e7   : > { %1530 = vmatpush2.bf16.msra.mxu0 %v4133_v54  ;;  %3922 = vmatprep.subr.bf16.mxu1 %v4598_v56 }
 0x1e8   : > { %1585 = vmatprep.subr.bf16.mxu0 %v4136_v13  ;;  %v1007_v13 = vsub.s32 4, %v4951_v58 }
 0x1e9   : > { %1575 = vmatmul.mubr.bf16.vlgmr.msra.gmra.mxu1 %v4943_v55 }
 0x1ea   : > { %1532 = vmatmul.mubr.bf16.vlgmr.msra.gmra.mxu0 %v4943_v55  ;;  %3924 = vmatprep.mubr.msk.bf16.mxu1 %vm4599_vm0, %v4598_v56 }
 0x1eb   : > { %1617 = vmatprep.mubr.bf16.mxu0 %v890_v38  ;;  %1586 = vmatpush1.bf16.msra.mxu0 %v4134_v12  ;;  %v4175_v38 = vld [vmem:[%s4788_s13 + $0x1f4] ss:$24 sps:$4 sm:$0xff]  }
 0x1ec   : > { %1587 = vmatprep.subr.bf16.mxu0 %v4139_v14 }
 0x1ef   : > { %1588 = vmatpush1.bf16.msra.mxu0 %v4137_v15  ;;  %v1008_v15 = vrot.slane %v4955_v60, %v1007_v13 }
 0x1f0   : > { %1589 = vmatprep.subr.bf16.mxu0 %v4142_v16 }
 0x1f3   : > { %1590 = vmatpush1.bf16.msra.mxu0 %v4140_v17 }
 0x1f4   : > { %1591 = vmatprep.subr.bf16.mxu0 %v4145_v18 }
 0x1f7   : > { %1592 = vmatpush1.bf16.msra.mxu0 %v4143_v19 }
 0x1f8   : > { %1593 = vmatprep.subr.bf16.mxu0 %v4148_v20 }
 0x1fb   : > { %1594 = vmatpush1.bf16.msra.mxu0 %v4146_v21  ;;  %v4182_v21 = vld [vmem:[%s4823_s22 + $0x70] ss:$8 sps:$4 sm:$0xff]  }
 0x1fc   : > { %1595 = vmatprep.subr.bf16.mxu0 %v4151_v22  ;;  %v4184_v22 = vld [vmem:[%s4823_s22 + $0x74] ss:$8 sps:$4 sm:$0xff]  }
 0x1ff   : > { %1596 = vmatpush1.bf16.msra.mxu0 %v4149_v23  ;;  %v4187_v23 = vld [vmem:[%s4823_s22 + $0x64] ss:$8 sps:$4 sm:$0xff]  }
 0x200   : > { %1597 = vmatprep.subr.bf16.mxu0 %v4154_v24  ;;  %v4185_v24 = vld [vmem:[%s4823_s22 + $0x60] ss:$8 sps:$4 sm:$0xff]  }
 0x203   : > { %1598 = vmatpush1.bf16.msra.mxu0 %v4152_v25  ;;  %v4190_v25 = vld [vmem:[%s4823_s22 + $0x54] ss:$8 sps:$4 sm:$0xff]  }
 0x204   : > { %1599 = vmatprep.subr.bf16.mxu0 %v4157_v26  ;;  %v4188_v26 = vld [vmem:[%s4823_s22 + $0x50] ss:$8 sps:$4 sm:$0xff]  }
 0x207   : > { %1600 = vmatpush1.bf16.msra.mxu0 %v4155_v27  ;;  %v4193_v27 = vld [vmem:[%s4823_s22 + $0x44] ss:$8 sps:$4 sm:$0xff]  }
 0x208   : > { %1601 = vmatprep.subr.bf16.mxu0 %v4160_v28  ;;  %v4191_v28 = vld [vmem:[%s4823_s22 + $0x40] ss:$8 sps:$4 sm:$0xff]  }
 0x20b   : > { %1602 = vmatpush2.bf16.msra.mxu0 %v4158_v29  ;;  %v4196_v29 = vld [vmem:[%s4823_s22 + $0x34] ss:$8 sps:$4 sm:$0xff]  }
 0x20c   : > { %1603 = vmatprep.subr.bf16.mxu0 %v4163_v30  ;;  %v4194_v30 = vld [vmem:[%s4823_s22 + $0x30] ss:$8 sps:$4 sm:$0xff]  }
 0x20f   : > { %1604 = vmatpush2.bf16.msra.mxu0 %v4161_v31  ;;  %v4199_v31 = vld [vmem:[%s4823_s22 + $0x24] ss:$8 sps:$4 sm:$0xff]  }
 0x210   : > { %1605 = vmatprep.subr.bf16.mxu0 %v4166_v32  ;;  %v4197_v32 = vld [vmem:[%s4823_s22 + $0x20] ss:$8 sps:$4 sm:$0xff]  }
 0x213   : > { %1606 = vmatpush2.bf16.msra.mxu0 %v4164_v33  ;;  %v4202_v33 = vld [vmem:[%s4823_s22 + $0x14] ss:$8 sps:$4 sm:$0xff]  }
 0x214   : > { %1607 = vmatprep.subr.bf16.mxu0 %v4169_v34  ;;  %v4200_v34 = vld [vmem:[%s4823_s22 + $0x10] ss:$8 sps:$4 sm:$0xff]  }
 0x217   : > { %1608 = vmatpush2.bf16.msra.mxu0 %v4167_v35 }
 0x218   : > { %1609 = vmatprep.subr.bf16.mxu0 %v4172_v36 }
 0x21b   : > { %1610 = vmatpush2.bf16.msra.mxu0 %v4170_v37  ;;  %v1003_v37 = vsub.s32 3, %v4951_v58 }
 0x21c   : > { %1611 = vmatprep.subr.bf16.mxu0 %v4175_v38 }
 0x21f   : > { %1612 = vmatpush2.bf16.msra.mxu0 %v4173_v39  ;;  %v1004_v39 = vrot.slane %v4955_v60, %v1003_v37 }
 0x220   : > { %1613 = vmatprep.subr.bf16.mxu0 %v4178_v40  ;;  %v5042_v40 = vsub.s32 1, %v4951_v58 }
 0x223   : > { %1614 = vmatpush2.bf16.msra.mxu0 %v4176_v41 }
 0x224   : > { %1615 = vmatprep.subr.bf16.mxu0 %v4181_v42 }
 0x227   : > { %1616 = vmatpush2.bf16.msra.mxu0 %v4179_v43  ;;  %v1011_v43 = vsub.s32 5, %v4951_v58 }
 0x228   : > { %2103 = vmatprep.subr.bf16.mxu0 %v4184_v22 }
 0x22a   : > { %1618 = vmatmul.mubr.bf16.vlgmr.msra.gmra.mxu0 %v4943_v55 }
 0x22b   : > { %2104 = vmatpush1.bf16.msra.mxu0 %v4182_v21 }
 0x22c   : > { %2105 = vmatprep.subr.bf16.mxu0 %v4187_v23 }
 0x22f   : > { %2106 = vmatpush1.bf16.msra.mxu0 %v4185_v24 }
 0x230   : > { %2107 = vmatprep.subr.bf16.mxu0 %v4190_v25 }
 0x233   : > { %2108 = vmatpush1.bf16.msra.mxu0 %v4188_v26 }
 0x234   : > { %2109 = vmatprep.subr.bf16.mxu0 %v4193_v27 }
 0x237   : > { %2110 = vmatpush1.bf16.msra.mxu0 %v4191_v28  ;;  %v4208_v28 = vld [vmem:[%s4823_s22 + $0xf4] ss:$8 sps:$4 sm:$0xff]  }
 0x238   : > { %2111 = vmatprep.subr.bf16.mxu0 %v4196_v29 }
 0x23b   : > { %2112 = vmatpush1.bf16.msra.mxu0 %v4194_v30 }
 0x23c   : > { %2113 = vmatprep.subr.bf16.mxu0 %v4199_v31 }
 0x23f   : > { %2114 = vmatpush1.bf16.msra.mxu0 %v4197_v32 }
 0x240   : > { %2115 = vmatprep.subr.bf16.mxu0 %v4202_v33 }
 0x243   : > { %2116 = vmatpush1.bf16.msra.mxu0 %v4200_v34 }
 0x2a9   : > { %v1576_v61 = vpop.f32.mrf.mxu1 }
 0x2aa   : > { %v1533_v0 = vpop.f32.mrf.mxu0  ;;  %v1577_v3 = vadd.f32 %v1576_v61, %v1000_v62 }
 0x2ab   : > { %v4963_v1 = vpop.f32.mrf.mxu1  ;;  %v1534_v9 = vadd.f32 %v1533_v0, %v992_v6 }
 0x2ac   : > { %v4965_v4 = vpop.f32.mrf.mxu0 }
 0x2ad   : > { %v1580_v2 = vpop.f32.mrf.mxu1 }
 0x2ae   : > { %v1581_v5 = vadd.f32 %v1580_v2, %v1000_v62  ;;  %v1537_v8 = vpop.f32.mrf.mxu0 }
 0x2af   : > { %v1538_v10 = vadd.f32 %v1537_v8, %v992_v6  ;;  %v5005_v44 = vpop.f32.mrf.mxu1 }
 0x2b0   : > { %v1662_v7 = vpack.c.bf16 %v1581_v5, %v1577_v3  ;;  %v1539_v12 = vpop.f32.mrf.mxu0  ;;  %v1583_v42 = vadd.f32 %v5005_v44, %v1004_v39 }
 0x2b1   : > { %v1661_v11 = vpack.c.bf16 %v1538_v10, %v1534_v9 }
 0x2b2   : > { %3923 = vmatpush3.bf16.xpose.msra.mxu1 %v1662_v7 }
 0x2b3   : > { %3928 = vmatprep.subr.bf16.mxu1 %v4598_v56 }
 0x2b9   : > { %3925 = vmatmul.mubr.bf16.vlgmr.msra.gmra.mxu1 %v1661_v11 }
 0x2ba   : > { %3930 = vmatprep.mubr.msk.bf16.mxu1 %vm4599_vm0, %v4598_v56 }
 0x2ea   : > { %v1619_v14 = vpop.f32.mrf.mxu0 }
 0x2eb   : > { %v1620_v17 = vadd.f32 %v1619_v14, %v1008_v15 }
 0x2ec   : > { %v1621_v16 = vpop.f32.mrf.mxu0 }
 0x2ee   : > { %v1623_v18 = vpop.f32.mrf.mxu0 }
 0x2ef   : > { %v1624_v19 = vadd.f32 %v1623_v18, %v1008_v15 }
 0x2f1   : > { %v1663_v20 = vpack.c.bf16 %v1624_v19, %v1620_v17 }
 0x2f3   : > { %3929 = vmatpush3.bf16.msra.mxu1 %v1663_v20 }
 0x2f4   : > { %3934 = vmatprep.subr.bf16.mxu1 %v4598_v56 }
 0x379   : > { %v1698_v45 = vpop.f32.mrf.mxu1 }
 0x37a   : > { %v1705_v47 = vmul.f32 0.088388346, %v1698_v45 }
 0x37b   : > { %v3926_v48 = vpop.f32.mrf.mxu1 }
 0x37c   : > { %v1713_v49 = vadd.f32 %v5012_v46, %v1705_v47  ;;  %v1579_v48 = vadd.f32 %v4963_v1, %v1004_v39  ;;  %v4209_v39 = vld [vmem:[%s4823_s22 + $0xe0] ss:$8 sps:$4 sm:$0xff]  }
 0x37d   : > { %v1701_v50 = vpop.f32.mrf.mxu1 }
 0x37e   : > { %v1706_v51 = vmul.f32 0.088388346, %v1701_v50  ;;  %v1716_v54 = vsel %vm1715_vm1, %v1713_v49, -inf }
 0x37f   : > { %1717 = vmax.xlane.f32.xlu0 %v1716_v54  ;;  %v3927_v55 = vpop.f32.mrf.mxu1  ;;  %v1012_v54 = vrot.slane %v4955_v60, %v1011_v43  ;;  %v4217_v43 = vld [vmem:[%s4823_s22 + $0xc4] ss:$8 sps:$4 sm:$0xff]  }
 0x380   : > { %v1714_v61 = vadd.f32 %v5012_v46, %v1706_v51  ;;  %v1785_v51 = vpack.c.bf16 %v1583_v42, %v1579_v48  ;;  %v1625_v55 = vpop.f32.mrf.mxu0  ;;  %v4212_v42 = vld [vmem:[%s4823_s22 + $0xd0] ss:$8 sps:$4 sm:$0xff]  }
 0x381   : > { %v1622_v1 = vadd.f32 %v1621_v16, %v1012_v54  ;;  %v4218_v48 = vld [vmem:[%s4823_s22 + $0xb0] ss:$8 sps:$4 sm:$0xff]  }
 0x382   : > { %v1719_v62 = vsel %vm1715_vm1, %v1714_v61, -inf }
 0x383   : > { %1720 = vmax.xlane.f32.xlu0 %v1719_v62  ;;  %v1626_v62 = vadd.f32 %v1625_v55, %v1012_v54  ;;  %v4224_v54 = vld [vmem:[%s4823_s22 + $0x90] ss:$8 sps:$4 sm:$0xff]   ;;  %v4227_v55 = vld [vmem:[%s4823_s22 + $0x80] ss:$8 sps:$4 sm:$0xff]  }
 0x408   : > { %v1718_v0 = vpop.xlane.xlu0 %1717 }
 0x409   : > { %v1722_v2 = vsub.f32 %v1713_v49, %v1718_v0  ;;  %v996_v49 = vrot.slane %v4955_v60, %v5042_v40  ;;  %v4203_v60 = vld [vmem:[%s4823_s22] ss:$8 sps:$4 sm:$0xff]  }
 0x40b   : > { %v1724_v3 = vmul.f32 1.442695, %v1722_v2  ;;  %v1536_v44 = vadd.f32 %v4965_v4, %v996_v49  ;;  %v1786_v2 = vpack.c.bf16 %v1626_v62, %v1622_v1 }
 0x40c   : > { %v1721_v5 = vpop.xlane.xlu0 %1720 }
 0x40d   : > { %4422 = vpow2.f32 %v1724_v3  ;;  %v1723_v6 = vsub.f32 %v1714_v61, %v1721_v5  ;;  %v1540_v61 = vadd.f32 %v1539_v12, %v996_v49  ;;  %v4205_v3 = vld [vmem:[%s4823_s22 + $0x4] ss:$8 sps:$4 sm:$0xff]   ;;  %v4600_v5 = vmov 0  }
 0x40e   : > { %2117 = vmatprep.subr.bf16.mxu0 %v4205_v3  ;;  %2135 = vmatprep.mubr.bf16.mxu0 %v4600_v5  ;;  %v4223_v49 = vld [vmem:[%s4823_s22 + $0xa4] ss:$8 sps:$4 sm:$0xff]   ;;  %v2146_v3 = vld [vmem:[%s5437_s19] sm:$0x3] }
 0x40f   : > { %v1726_v7 = vmul.f32 1.442695, %v1723_v6  ;;  %v1784_v0 = vpack.c.bf16 %v1540_v61, %v1536_v44  ;;  %2118 = vmatpush1.bf16.msra.mxu0 %v4203_v60  ;;  %v4229_v44 = vld [vmem:[%s4823_s22 + $0x84] ss:$8 sps:$4 sm:$0xff]  }
 0x411   : > { %4424 = vpow2.f32 %v1726_v7 }
 0x41a   : > { %v4423_v8 = vpop.eup %4422 }
 0x41b   : > { %v1728_v9 = vsel %vm1715_vm1, %v4423_v8, 0.0 }
 0x41c   : > { %1729 = vadd.xlane.f32.xlu1 %v1728_v9 }
 0x41e   : > { %v4425_v10 = vpop.eup %4424 }
 0x41f   : > { %v1731_v11 = vsel %vm1715_vm1, %v4425_v10, 0.0 }
 0x420   : > { %1732 = vadd.xlane.f32.xlu1 %v1731_v11 }
 0x4a5   : > { %v1730_v35 = vpop.xlane.xlu1 %1729 }
 0x4a6   : > { %4426 = vrcp.f32 %v1730_v35  ;;  %v4206_v35 = vld [vmem:[%s4823_s22 + $0xf0] ss:$8 sps:$4 sm:$0xff]  }
 0x4a9   : > { %v1733_v36 = vpop.xlane.xlu1 %1732 }
 0x4aa   : > { %4428 = vrcp.f32 %v1733_v36 }
 0x4b3   : > { %v4427_v38 = vpop.eup %4426 }
 0x4b4   : > { %v1736_v45 = vmul.f32 %v4427_v38, %v4423_v8  ;;  %v4211_v38 = vld [vmem:[%s4823_s22 + $0xe4] ss:$8 sps:$4 sm:$0xff]  }
 0x4b7   : > { %v4429_v41 = vpop.eup %4428 }
 0x4b8   : > { %v1737_v47 = vmul.f32 %v4429_v41, %v4425_v10  ;;  %v4214_v41 = vld [vmem:[%s4823_s22 + $0xd4] ss:$8 sps:$4 sm:$0xff]  }
 0x4ba   : > { %v1738_v50 = vpack.c.bf16 %v1737_v47, %v1736_v45  ;;  %v4215_v45 = vld [vmem:[%s4823_s22 + $0xc0] ss:$8 sps:$4 sm:$0xff]   ;;  %v4220_v47 = vld [vmem:[%s4823_s22 + $0xb4] ss:$8 sps:$4 sm:$0xff]  }
 0x4bc   : > { %3931 = vmatmul.mubr.msk.bf16.vlgmr.msra.gmra.mxu1 %vm1715_vm1, %v1738_v50  ;;  %v4221_v50 = vld [vmem:[%s4823_s22 + $0xa0] ss:$8 sps:$4 sm:$0xff]  }
 0x4bd   : > { %3935 = vmatpush3.bf16.xpose.msra.mxu1 %v1785_v51  ;;  %3936 = vmatprep.mubr.msk.bf16.mxu1 %vm4599_vm0, %v4598_v56  ;;  %v4226_v51 = vld [vmem:[%s4823_s22 + $0x94] ss:$8 sps:$4 sm:$0xff]   ;;  %s5438_s22 = sld [smem:[#allocation17_spill]] }
 0x4be   : > { %3940 = vmatprep.subr.bf16.mxu1 %v4598_v56 }
 0x4c4   : > { %3937 = vmatmul.mubr.bf16.vlgmr.msra.gmra.mxu1 %v1784_v0 }
 0x4c5   : > { %3941 = vmatpush3.bf16.msra.mxu1 %v1786_v2  ;;  %3942 = vmatprep.mubr.msk.bf16.mxu1 %vm4599_vm0, %v4598_v56 }
 0x4c6   : > { %1980 = vmatprep.subr.bf16.mxu1 %v4208_v28  ;;  %v4233_v28 = vld [vmem:[%s4847_s28 + $0xe8] ss:$16 sps:$4 sm:$0xff]  }
 0x57c   : > { %v1776_v6 = vpop.f32.mrf.mxu1 }
 0x57e   : > { %v3932_v4 = vpop.f32.mrf.mxu1 }
 0x580   : > { %v1779_v7 = vpop.f32.mrf.mxu1 }
 0x581   : > { %v1783_v8 = vpack.c.bf16 %v1779_v7, %v1776_v6  ;;  %v2151_v6 = vrot.slane %v2146_v3, %v4961_v63 }
 0x582   : > { %v3933_v9 = vpop.f32.mrf.mxu1 }
 0x583   : > { %2136 = vmatmul.mubr.bf16.vlgmr.msra.gmra.mxu0 %v1783_v8  ;;  %v2155_v8 = vrot.slane %v2146_v3, %v5042_v40  ;;  %v4280_v3 = vld [vmem:[%s4847_s28 + $0x1e4] ss:$16 sps:$4 sm:$0xff]  }
 0x584   : > { %v1821_v10 = vpop.f32.mrf.mxu1 }
 0x585   : > { %v1828_v11 = vmul.f32 0.088388346, %v1821_v10 }
 0x586   : > { %v3938_v12 = vpop.f32.mrf.mxu1 }
 0x587   : > { %v1830_v13 = vadd.f32 %v5012_v46, %v1828_v11 }
 0x588   : > { %v1824_v14 = vpop.f32.mrf.mxu1 }
 0x589   : > { %v1829_v15 = vmul.f32 0.088388346, %v1824_v14  ;;  %v1832_v56 = vsel %vm1715_vm1, %v1830_v13, -inf }
 0x58a   : > { %1833 = vmax.xlane.f32.xlu0 %v1832_v56  ;;  %v3939_v16 = vpop.f32.mrf.mxu1 }
 0x58b   : > { %v1831_v17 = vadd.f32 %v5012_v46, %v1829_v15 }
 0x58d   : > { %v1835_v18 = vsel %vm1715_vm1, %v1831_v17, -inf }
 0x58e   : > { %1836 = vmax.xlane.f32.xlu1 %v1835_v18 }
 0x613   : > { %v1834_v19 = vpop.xlane.xlu0 %1833 }
 0x614   : > { %v1838_v20 = vsub.f32 %v1830_v13, %v1834_v19 }
 0x616   : > { %v1840_v21 = vmul.f32 1.442695, %v1838_v20  ;;  %v4462_v20 = vld [vmem:[#allocation2] sm:$0xff] }
 0x617   : > { %v1837_v22 = vpop.xlane.xlu1 %1836 }
 0x618   : > { %4430 = vpow2.f32 %v1840_v21  ;;  %v1839_v23 = vsub.f32 %v1831_v17, %v1837_v22 }
 0x61a   : > { %v1842_v24 = vmul.f32 1.442695, %v1839_v23 }
 0x61c   : > { %4432 = vpow2.f32 %v1842_v24 }
 0x625   : > { %v4431_v25 = vpop.eup %4430 }
 0x626   : > { %v1844_v26 = vsel %vm1715_vm1, %v4431_v25, 0.0 }
 0x627   : > { %1845 = vadd.xlane.f32.xlu0 %v1844_v26 }
 0x629   : > { %v4433_v27 = vpop.eup %4432 }
 0x62a   : > { %v1847_v46 = vsel %vm1715_vm1, %v4433_v27, 0.0 }
 0x62b   : > { %1848 = vadd.xlane.f32.xlu1 %v1847_v46  ;;  %v4232_v46 = vld [vmem:[%s4847_s28 + $0xe4] ss:$16 sps:$4 sm:$0xff]  }
 0x643   : > { %v2137_v60 = vpop.f32.mrf.mxu0 }
 0x6b0   : > { %v1846_v29 = vpop.xlane.xlu0 %1845 }
 0x6b1   : > { %4434 = vrcp.f32 %v1846_v29  ;;  %v4235_v29 = vld [vmem:[%s4847_s28 + $0xec] ss:$16 sps:$4 sm:$0xff]  }
 0x6b2   : > { %2682 = vmatprep.subr.bf16.mxu0 %v4235_v29  ;;  %v4301_v29 = vld [vmem:[%s4847_s28 + $0x18c] ss:$16 sps:$4 sm:$0xff]  }
 0x6b3   : > { %2683 = vmatpush1.bf16.msra.mxu0 %v4233_v28  ;;  %v4299_v28 = vld [vmem:[%s4847_s28 + $0x188] ss:$16 sps:$4 sm:$0xff]  }
 0x6b4   : > { %v1849_v30 = vpop.xlane.xlu1 %1848 }
 0x6b5   : > { %4436 = vrcp.f32 %v1849_v30  ;;  %v4238_v30 = vld [vmem:[%s4847_s28 + $0xc4] ss:$16 sps:$4 sm:$0xff]  }
 0x6be   : > { %v4435_v31 = vpop.eup %4434 }
 0x6bf   : > { %v1852_v33 = vmul.f32 %v4435_v31, %v4431_v25  ;;  %v4463_v25 = vld [vmem:[#allocation2 + $0x8] sm:$0xff]  ;;  %v4236_v31 = vld [vmem:[%s4847_s28 + $0xc0] ss:$16 sps:$4 sm:$0xff]  }
 0x6c2   : > { %v4437_v32 = vpop.eup %4436 }
 0x6c3   : > { %v1853_v34 = vmul.f32 %v4437_v32, %v4433_v27  ;;  %v4230_v27 = vld [vmem:[%s4847_s28 + $0xe0] ss:$16 sps:$4 sm:$0xff]   ;;  %v4239_v32 = vld [vmem:[%s4847_s28 + $0xc8] ss:$16 sps:$4 sm:$0xff]  }
 0x6c5   : > { %v1854_v36 = vpack.c.bf16 %v1853_v34, %v1852_v33  ;;  %v4244_v33 = vld [vmem:[%s4847_s28 + $0xa4] ss:$16 sps:$4 sm:$0xff]   ;;  %v4247_v34 = vld [vmem:[%s4847_s28 + $0xac] ss:$16 sps:$4 sm:$0xff]  }
 0x6c7   : > { %3943 = vmatmul.mubr.msk.bf16.vlgmr.msra.gmra.mxu1 %vm1715_vm1, %v1854_v36  ;;  %v4245_v36 = vld [vmem:[%s4847_s28 + $0xa8] ss:$16 sps:$4 sm:$0xff]  }
 0x6c8   : > { %1981 = vmatpush1.bf16.msra.mxu1 %v4206_v35  ;;  %2012 = vmatprep.mubr.bf16.mxu1 %v4600_v5  ;;  %v2139_v5 = vpop.f32.mrf.mxu0  ;;  %v4242_v35 = vld [vmem:[%s4847_s28 + $0xa0] ss:$16 sps:$4 sm:$0xff]  }
 0x6c9   : > { %1982 = vmatprep.subr.bf16.mxu1 %v4211_v38  ;;  %v4250_v38 = vld [vmem:[%s4847_s28 + $0x84] ss:$16 sps:$4 sm:$0xff]  }
 0x6ca   : > { %v2141_v9 = vpop.f32.mrf.mxu0 }
 0x6cc   : > { %1983 = vmatpush1.bf16.msra.mxu1 %v4209_v39  ;;  %v2143_v56 = vpop.f32.mrf.mxu0  ;;  %v4253_v39 = vld [vmem:[%s4847_s28 + $0x8c] ss:$16 sps:$4 sm:$0xff]  }
 0x6cd   : > { %1984 = vmatprep.subr.bf16.mxu1 %v4214_v41  ;;  %v4248_v41 = vld [vmem:[%s4847_s28 + $0x80] ss:$16 sps:$4 sm:$0xff]  }
 0x6d0   : > { %1985 = vmatpush1.bf16.msra.mxu1 %v4212_v42  ;;  %v4251_v42 = vld [vmem:[%s4847_s28 + $0x88] ss:$16 sps:$4 sm:$0xff]  }
 0x6d1   : > { %1986 = vmatprep.subr.bf16.mxu1 %v4217_v43  ;;  %v4256_v43 = vld [vmem:[%s4847_s28 + $0x64] ss:$16 sps:$4 sm:$0xff]  }
 0x6d4   : > { %1987 = vmatpush1.bf16.msra.mxu1 %v4215_v45  ;;  %v4259_v45 = vld [vmem:[%s4847_s28 + $0x6c] ss:$16 sps:$4 sm:$0xff]  }
 0x6d5   : > { %1988 = vmatprep.subr.bf16.mxu1 %v4220_v47  ;;  %v4254_v47 = vld [vmem:[%s4847_s28 + $0x60] ss:$16 sps:$4 sm:$0xff]  }
 0x6d8   : > { %1989 = vmatpush1.bf16.msra.mxu1 %v4218_v48  ;;  %v4257_v48 = vld [vmem:[%s4847_s28 + $0x68] ss:$16 sps:$4 sm:$0xff]  }
 0x6d9   : > { %1990 = vmatprep.subr.bf16.mxu1 %v4223_v49  ;;  %v4262_v49 = vld [vmem:[%s4847_s28 + $0x44] ss:$16 sps:$4 sm:$0xff]  }
 0x6dc   : > { %1991 = vmatpush1.bf16.msra.mxu1 %v4221_v50  ;;  %v4265_v50 = vld [vmem:[%s4847_s28 + $0x4c] ss:$16 sps:$4 sm:$0xff]  }
 0x6dd   : > { %1992 = vmatprep.subr.bf16.mxu1 %v4226_v51  ;;  %v4260_v51 = vld [vmem:[%s4847_s28 + $0x40] ss:$16 sps:$4 sm:$0xff]  }
 0x6e0   : > { %1993 = vmatpush1.bf16.msra.mxu1 %v4224_v54  ;;  %v4263_v54 = vld [vmem:[%s4847_s28 + $0x48] ss:$16 sps:$4 sm:$0xff]  }
 0x6e1   : > { %1994 = vmatprep.subr.bf16.mxu1 %v4229_v44  ;;  %v4271_v44 = vld [vmem:[%s4847_s28 + $0x2c] ss:$16 sps:$4 sm:$0xff]  }
 0x6e4   : > { %1995 = vmatpush1.bf16.msra.mxu1 %v4227_v55  ;;  %v4268_v55 = vld [vmem:[%s4847_s28 + $0x24] ss:$16 sps:$4 sm:$0xff]  }
 0x6e5   : > { %2639 = vmatprep.subr.bf16.mxu1 %v4232_v46  ;;  %v4296_v46 = vld [vmem:[%s4847_s28 + $0x180] ss:$16 sps:$4 sm:$0xff]  }
 0x787   : > { %v1892_v61 = vpop.f32.mrf.mxu1 }
 0x789   : > { %v3944_v1 = vpop.f32.mrf.mxu1 }
 0x78a   : > { %v4269_v1 = vld [vmem:[%s4847_s28 + $0x28] ss:$16 sps:$4 sm:$0xff]  }
 0x78b   : > { %v1895_v62 = vpop.f32.mrf.mxu1 }
 0x78c   : > { %v1899_v0 = vpack.c.bf16 %v1895_v62, %v1892_v61  ;;  %v4266_v61 = vld [vmem:[%s4847_s28 + $0x20] ss:$16 sps:$4 sm:$0xff]   ;;  %v4274_v62 = vld [vmem:[%s4847_s28 + $0x4] ss:$16 sps:$4 sm:$0xff]  }
 0x78d   : > { %v3945_v2 = vpop.f32.mrf.mxu1 }
 0x78e   : > { %2013 = vmatmul.mubr.bf16.vlgmr.msra.gmra.mxu1 %v1899_v0  ;;  %v4277_v0 = vld [vmem:[%s4847_s28 + $0xc] ss:$16 sps:$4 sm:$0xff]   ;;  %v4272_v2 = vld [vmem:[%s4847_s28] ss:$16 sps:$4 sm:$0xff]  }
 0x78f   : > { %2640 = vmatpush1.bf16.msra.mxu1 %v4230_v27  ;;  %v4298_v27 = vld [vmem:[%s4847_s28 + $0x184] ss:$16 sps:$4 sm:$0xff]  }
 0x790   : > { %2641 = vmatprep.subr.bf16.mxu1 %v4238_v30  ;;  %v4304_v30 = vld [vmem:[%s4847_s28 + $0x164] ss:$16 sps:$4 sm:$0xff]  }
 0x793   : > { %2642 = vmatpush1.bf16.msra.mxu1 %v4236_v31  ;;  %v4302_v31 = vld [vmem:[%s4847_s28 + $0x160] ss:$16 sps:$4 sm:$0xff]  }
 0x794   : > { %2643 = vmatprep.subr.bf16.mxu1 %v4244_v33  ;;  %v4310_v33 = vld [vmem:[%s4847_s28 + $0x144] ss:$16 sps:$4 sm:$0xff]  }
 0x797   : > { %2644 = vmatpush1.bf16.msra.mxu1 %v4242_v35  ;;  %v4308_v35 = vld [vmem:[%s4847_s28 + $0x140] ss:$16 sps:$4 sm:$0xff]  }
 0x798   : > { %2645 = vmatprep.subr.bf16.mxu1 %v4250_v38  ;;  %v4316_v38 = vld [vmem:[%s4847_s28 + $0x124] ss:$16 sps:$4 sm:$0xff]  }
 0x79b   : > { %2646 = vmatpush1.bf16.msra.mxu1 %v4248_v41  ;;  %v4314_v41 = vld [vmem:[%s4847_s28 + $0x120] ss:$16 sps:$4 sm:$0xff]  }
 0x79c   : > { %2647 = vmatprep.subr.bf16.mxu1 %v4256_v43  ;;  %v4322_v43 = vld [vmem:[%s4847_s28 + $0x104] ss:$16 sps:$4 sm:$0xff]  }
 0x79f   : > { %2648 = vmatpush1.bf16.msra.mxu1 %v4254_v47  ;;  %v4320_v47 = vld [vmem:[%s4847_s28 + $0x100] ss:$16 sps:$4 sm:$0xff]  }
 0x7a0   : > { %2649 = vmatprep.subr.bf16.mxu1 %v4262_v49  ;;  %v4328_v49 = vld [vmem:[%s5438_s22 + $0x74] ss:$8 sps:$4 sm:$0xff]  }
 0x7a3   : > { %2650 = vmatpush1.bf16.msra.mxu1 %v4260_v51 }
 0x7a4   : > { %2651 = vmatprep.subr.bf16.mxu1 %v4268_v55 }
 0x7a7   : > { %2652 = vmatpush1.bf16.msra.mxu1 %v4266_v61 }
 0x7a8   : > { %2653 = vmatprep.subr.bf16.mxu1 %v4274_v62  ;;  %v2166_v62 = vld [vmem:[%s5440_s4] sm:$0x3] }
 0x7ab   : > { %2654 = vmatpush1.bf16.msra.mxu1 %v4272_v2  ;;  %v2167_v2 = vld [vmem:[%s5442_s12] sm:$0x3] }
 0x7ac   : > { %2655 = vmatprep.subr.bf16.mxu1 %v4280_v3  ;;  %v2205_v3 = vrot.slane %v2166_v62, %v4961_v63 }
 0x84e   : > { %v2014_v4 = vpop.f32.mrf.mxu1 }
 0x84f   : > { %v2138_v7 = vadd.f32 %v2137_v60, %v2014_v4  ;;  %v4275_v60 = vld [vmem:[%s4847_s28 + $0x8] ss:$16 sps:$4 sm:$0xff]  }
 0x850   : > { %v2016_v10 = vpop.f32.mrf.mxu1  ;;  %v4281_v4 = vld [vmem:[%s4847_s28 + $0x1e8] ss:$16 sps:$4 sm:$0xff]  }
 0x851   : > { %v2158_v11 = vadd.f32 %v2151_v6, %v2138_v7  ;;  %v2140_v12 = vadd.f32 %v2139_v5, %v2016_v10  ;;  %v4283_v5 = vld [vmem:[%s4847_s28 + $0x1ec] ss:$16 sps:$4 sm:$0xff]  }
 0x852   : > { %v2018_v13 = vpop.f32.mrf.mxu1 }
 0x853   : > { %v2159_v14 = vadd.f32 %v2155_v8, %v2140_v12  ;;  %v2142_v15 = vadd.f32 %v2141_v9, %v2018_v13  ;;  %v5090_v19 = vadd.f32 %v2158_v11, %v4936_v52 }
 0x854   : > { %v2020_v16 = vpop.f32.mrf.mxu1 }
 0x855   : > { %v2160_v17 = vadd.f32 %v2151_v6, %v2142_v15  ;;  %v2144_v18 = vadd.f32 %v2143_v56, %v2020_v16  ;;  %v5092_v21 = vadd.f32 %v4462_v20, %v2159_v14  ;;  %v4278_v6 = vld [vmem:[%s4847_s28 + $0x1e0] ss:$16 sps:$4 sm:$0xff]   ;;  %v4286_v20 = vld [vmem:[%s4847_s28 + $0x1c4] ss:$16 sps:$4 sm:$0xff]  }
 0x856   : > { %2656 = vmatpush2.bf16.msra.mxu1 %v4278_v6 }
 0x857   : > { %v2161_v22 = vadd.f32 %v2155_v8, %v2144_v18  ;;  %v2168_v23 = vadd.f32 %v5092_v21, %v5090_v19  ;;  %v5097_v24 = vadd.f32 %v2160_v17, %v4938_v53  ;;  %v4241_v53 = vld [vmem:[%s4847_s28 + $0xcc] ss:$16 sps:$4 sm:$0xff]   ;;  %2657 = vmatprep.subr.bf16.mxu1 %v4286_v20 }
 0x858   : > { %2684 = vmatprep.subr.bf16.mxu0 %v4241_v53  ;;  %v4307_v53 = vld [vmem:[%s4847_s28 + $0x16c] ss:$16 sps:$4 sm:$0xff]  }
 0x859   : > { %2169 = vadd.xlane.f32.xlu0 %v2168_v23  ;;  %v5099_v26 = vadd.f32 %v4463_v25, %v2161_v22  ;;  %2685 = vmatpush1.bf16.msra.mxu0 %v4239_v32  ;;  %v4284_v22 = vld [vmem:[%s4847_s28 + $0x1c0] ss:$16 sps:$4 sm:$0xff]   ;;  %v4287_v23 = vld [vmem:[%s4847_s28 + $0x1c8] ss:$16 sps:$4 sm:$0xff]   ;;  %v4295_v25 = vld [vmem:[%s4847_s28 + $0x1ac] ss:$16 sps:$4 sm:$0xff]  }
 0x85a   : > { %2686 = vmatprep.subr.bf16.mxu0 %v4247_v34  ;;  %2658 = vmatpush2.bf16.msra.mxu1 %v4284_v22  ;;  %v4305_v32 = vld [vmem:[%s4847_s28 + $0x168] ss:$16 sps:$4 sm:$0xff]   ;;  %v4313_v34 = vld [vmem:[%s4847_s28 + $0x14c] ss:$16 sps:$4 sm:$0xff]  }
 0x85b   : > { %v2171_v52 = vadd.f32 %v5099_v26, %v5097_v24  ;;  %v4334_v22 = vld [vmem:[%s5438_s22 + $0x64] ss:$8 sps:$4 sm:$0xff]  }
 0x85d   : > { %2172 = vadd.xlane.f32.xlu1 %v2171_v52  ;;  %2687 = vmatpush1.bf16.msra.mxu0 %v4245_v36  ;;  %v4293_v52 = vld [vmem:[%s4847_s28 + $0x1a8] ss:$16 sps:$4 sm:$0xff]  }
 0x85e   : > { %2688 = vmatprep.subr.bf16.mxu0 %v4253_v39  ;;  %v4311_v36 = vld [vmem:[%s4847_s28 + $0x148] ss:$16 sps:$4 sm:$0xff]   ;;  %v4319_v39 = vld [vmem:[%s4847_s28 + $0x12c] ss:$16 sps:$4 sm:$0xff]  }
 0x861   : > { %2689 = vmatpush1.bf16.msra.mxu0 %v4251_v42  ;;  %v4317_v42 = vld [vmem:[%s4847_s28 + $0x128] ss:$16 sps:$4 sm:$0xff]  }
 0x862   : > { %2690 = vmatprep.subr.bf16.mxu0 %v4259_v45  ;;  %v4325_v45 = vld [vmem:[%s4847_s28 + $0x10c] ss:$16 sps:$4 sm:$0xff]  }
 0x865   : > { %2691 = vmatpush1.bf16.msra.mxu0 %v4257_v48  ;;  %v4323_v48 = vld [vmem:[%s4847_s28 + $0x108] ss:$16 sps:$4 sm:$0xff]  }
 0x866   : > { %2692 = vmatprep.subr.bf16.mxu0 %v4265_v50  ;;  %v4331_v50 = vld [vmem:[%s5438_s22 + $0x174] ss:$8 sps:$4 sm:$0xff]  }
 0x869   : > { %2693 = vmatpush1.bf16.msra.mxu0 %v4263_v54 }
 0x86a   : > { %2694 = vmatprep.subr.bf16.mxu0 %v4271_v44 }
 0x86d   : > { %2695 = vmatpush1.bf16.msra.mxu0 %v4269_v1 }
 0x86e   : > { %2696 = vmatprep.subr.bf16.mxu0 %v4277_v0 }
 0x871   : > { %2697 = vmatpush1.bf16.msra.mxu0 %v4275_v60 }
 0x872   : > { %2698 = vmatprep.subr.bf16.mxu0 %v4283_v5  ;;  %v2209_v5 = vrot.slane %v2166_v62, %v5042_v40  ;;  %v4380_v62 = vld [vmem:[%s5438_s22 + $0xe0] ss:$8 sps:$4 sm:$0xff]  }
 0x875   : > { %2699 = vmatpush2.bf16.msra.mxu0 %v4281_v4 }
 0x8e2   : > { %v2170_v7 = vpop.xlane.xlu0 %2169 }
 0x8e3   : > { %v2175_v8 = vmul.f32 0.00390625, %v2170_v7  ;;  %v2220_v7 = vrot.slane %v2167_v2, %v4961_v63 }
 0x8e5   : > { %v5140_v9 = vsub.f32 %v5090_v19, %v2175_v8  ;;  %v5143_v10 = vsub.f32 %v5092_v21, %v2175_v8  ;;  %v4289_v21 = vld [vmem:[%s4847_s28 + $0x1cc] ss:$16 sps:$4 sm:$0xff]   ;;  %v2224_v8 = vrot.slane %v2167_v2, %v5042_v40 }
 0x8e6   : > { %v2173_v11 = vpop.xlane.xlu1 %2172  ;;  %2700 = vmatprep.subr.bf16.mxu0 %v4289_v21  ;;  %v4329_v21 = vld [vmem:[%s5438_s22 + $0x170] ss:$8 sps:$4 sm:$0xff]   ;;  %v4388_v2 = vld [vmem:[%s5438_s22 + $0xd4] ss:$8 sps:$4 sm:$0xff]  }
 0x8e7   : > { %v2176_v12 = vmul.f32 0.00390625, %v2173_v11  ;;  %v2181_v13 = vmul.f32 %v5140_v9, %v5140_v9  ;;  %v2182_v14 = vmul.f32 %v5143_v10, %v5143_v10  ;;  %2701 = vmatpush2.bf16.msra.mxu0 %v4287_v23  ;;  %v4337_v23 = vld [vmem:[%s5438_s22 + $0x164] ss:$8 sps:$4 sm:$0xff]  }
 0x8e8   : > { %2702 = vmatprep.subr.bf16.mxu0 %v4295_v25  ;;  %v4335_v25 = vld [vmem:[%s5438_s22 + $0x160] ss:$8 sps:$4 sm:$0xff]  }
 0x8e9   : > { %v5150_v15 = vsub.f32 %v5097_v24, %v2176_v12  ;;  %v5153_v56 = vsub.f32 %v5099_v26, %v2176_v12  ;;  %v2185_v16 = vadd.f32 %v2182_v14, %v2181_v13  ;;  %v4292_v24 = vld [vmem:[%s4847_s28 + $0x1a4] ss:$16 sps:$4 sm:$0xff]   ;;  %v4290_v26 = vld [vmem:[%s4847_s28 + $0x1a0] ss:$16 sps:$4 sm:$0xff]  }
 0x8ea   : > { %2659 = vmatprep.subr.bf16.mxu1 %v4292_v24  ;;  %v4332_v24 = vld [vmem:[%s5438_s22 + $0x60] ss:$8 sps:$4 sm:$0xff]  }
 0x8eb   : > { %2186 = vadd.xlane.f32.xlu0 %v2185_v16  ;;  %v2183_v17 = vmul.f32 %v5150_v15, %v5150_v15  ;;  %v2184_v18 = vmul.f32 %v5153_v56, %v5153_v56  ;;  %2660 = vmatpush2.bf16.msra.mxu1 %v4290_v26  ;;  %v4340_v26 = vld [vmem:[%s5438_s22 + $0x54] ss:$8 sps:$4 sm:$0xff]  }
 0x8ec   : > { %2703 = vmatpush2.bf16.msra.mxu0 %v4293_v52  ;;  %2661 = vmatprep.subr.bf16.mxu1 %v4298_v27  ;;  %v4343_v52 = vld [vmem:[%s5438_s22 + $0x154] ss:$8 sps:$4 sm:$0xff]   ;;  %v4338_v27 = vld [vmem:[%s5438_s22 + $0x50] ss:$8 sps:$4 sm:$0xff]  }
 0x8ed   : > { %v2188_v19 = vadd.f32 %v2184_v18, %v2183_v17  ;;  %2704 = vmatprep.subr.bf16.mxu0 %v4301_v29  ;;  %v4349_v29 = vld [vmem:[%s5438_s22 + $0x144] ss:$8 sps:$4 sm:$0xff]  }
 0x8ef   : > { %2189 = vadd.xlane.f32.xlu1 %v2188_v19  ;;  %2662 = vmatpush2.bf16.msra.mxu1 %v4296_v46  ;;  %v4341_v46 = vld [vmem:[%s5438_s22 + $0x150] ss:$8 sps:$4 sm:$0xff]  }
 0x8f0   : > { %2705 = vmatpush2.bf16.msra.mxu0 %v4299_v28  ;;  %2663 = vmatprep.subr.bf16.mxu1 %v4304_v30  ;;  %v4346_v28 = vld [vmem:[%s5438_s22 + $0x44] ss:$8 sps:$4 sm:$0xff]   ;;  %v4344_v30 = vld [vmem:[%s5438_s22 + $0x40] ss:$8 sps:$4 sm:$0xff]  }
 0x8f1   : > { %2706 = vmatprep.subr.bf16.mxu0 %v4307_v53  ;;  %v4347_v53 = vld [vmem:[%s5438_s22 + $0x140] ss:$8 sps:$4 sm:$0xff]  }
 0x8f3   : > { %2664 = vmatpush2.bf16.msra.mxu1 %v4302_v31  ;;  %v4352_v31 = vld [vmem:[%s5438_s22 + $0x34] ss:$8 sps:$4 sm:$0xff]  }
 0x8f4   : > { %2707 = vmatpush2.bf16.msra.mxu0 %v4305_v32  ;;  %2665 = vmatprep.subr.bf16.mxu1 %v4310_v33  ;;  %v4355_v32 = vld [vmem:[%s5438_s22 + $0x134] ss:$8 sps:$4 sm:$0xff]   ;;  %v4350_v33 = vld [vmem:[%s5438_s22 + $0x30] ss:$8 sps:$4 sm:$0xff]  }
 0x8f5   : > { %2708 = vmatprep.subr.bf16.mxu0 %v4313_v34  ;;  %v4353_v34 = vld [vmem:[%s5438_s22 + $0x130] ss:$8 sps:$4 sm:$0xff]  }
 0x8f7   : > { %2666 = vmatpush2.bf16.msra.mxu1 %v4308_v35  ;;  %v4358_v35 = vld [vmem:[%s5438_s22 + $0x24] ss:$8 sps:$4 sm:$0xff]  }
 0x8f8   : > { %2709 = vmatpush2.bf16.msra.mxu0 %v4311_v36  ;;  %2667 = vmatprep.subr.bf16.mxu1 %v4316_v38  ;;  %v4361_v36 = vld [vmem:[%s5438_s22 + $0x124] ss:$8 sps:$4 sm:$0xff]   ;;  %v4356_v38 = vld [vmem:[%s5438_s22 + $0x20] ss:$8 sps:$4 sm:$0xff]  }
 0x8f9   : > { %2710 = vmatprep.subr.bf16.mxu0 %v4319_v39  ;;  %v4359_v39 = vld [vmem:[%s5438_s22 + $0x120] ss:$8 sps:$4 sm:$0xff]  }
 0x8fb   : > { %2668 = vmatpush2.bf16.msra.mxu1 %v4314_v41  ;;  %v4364_v41 = vld [vmem:[%s5438_s22 + $0x14] ss:$8 sps:$4 sm:$0xff]  }
 0x8fc   : > { %2711 = vmatpush2.bf16.msra.mxu0 %v4317_v42  ;;  %2669 = vmatprep.subr.bf16.mxu1 %v4322_v43  ;;  %v4367_v42 = vld [vmem:[%s5438_s22 + $0x114] ss:$8 sps:$4 sm:$0xff]   ;;  %v4362_v43 = vld [vmem:[%s5438_s22 + $0x10] ss:$8 sps:$4 sm:$0xff]  }
 0x8fd   : > { %2712 = vmatprep.subr.bf16.mxu0 %v4325_v45  ;;  %v4365_v45 = vld [vmem:[%s5438_s22 + $0x110] ss:$8 sps:$4 sm:$0xff]  }
 0x8ff   : > { %2670 = vmatpush2.bf16.msra.mxu1 %v4320_v47  ;;  %v4370_v47 = vld [vmem:[%s5438_s22 + $0x4] ss:$8 sps:$4 sm:$0xff]  }
 0x900   : > { %2713 = vmatpush2.bf16.msra.mxu0 %v4323_v48  ;;  %3197 = vmatprep.subr.bf16.mxu1 %v4328_v49  ;;  %v4373_v48 = vld [vmem:[%s5438_s22 + $0x104] ss:$8 sps:$4 sm:$0xff]   ;;  %v4368_v49 = vld [vmem:[%s5438_s22] ss:$8 sps:$4 sm:$0xff]  }
 0x901   : > { %3240 = vmatprep.subr.bf16.mxu0 %v4331_v50  ;;  %v4371_v50 = vld [vmem:[%s5438_s22 + $0x100] ss:$8 sps:$4 sm:$0xff]  }
 0x974   : > { %v2187_v51 = vpop.xlane.xlu0 %2186 }
 0x975   : > { %v2191_v54 = vmul.f32 0.00390625, %v2187_v51  ;;  %v4376_v51 = vld [vmem:[%s5438_s22 + $0xf4] ss:$8 sps:$4 sm:$0xff]  }
 0x977   : > { %v2193_v55 = vadd.f32 1e-12, %v2191_v54  ;;  %v4379_v54 = vld [vmem:[%s5438_s22 + $0x1f4] ss:$8 sps:$4 sm:$0xff]  }
 0x978   : > { %v2190_v44 = vpop.xlane.xlu1 %2189 }
 0x979   : > { %4438 = vrsqrt.f32 %v2193_v55  ;;  %v2192_v61 = vmul.f32 0.00390625, %v2190_v44  ;;  %v4374_v55 = vld [vmem:[%s5438_s22 + $0xf0] ss:$8 sps:$4 sm:$0xff]  }
 0x97a   : > { %v4377_v44 = vld [vmem:[%s5438_s22 + $0x1f0] ss:$8 sps:$4 sm:$0xff]  }
 0x97b   : > { %v2194_v1 = vadd.f32 1e-12, %v2192_v61  ;;  %v4382_v61 = vld [vmem:[%s5438_s22 + $0xe4] ss:$8 sps:$4 sm:$0xff]  }
 0x97d   : > { %4440 = vrsqrt.f32 %v2194_v1  ;;  %v4385_v1 = vld [vmem:[%s5438_s22 + $0x1e4] ss:$8 sps:$4 sm:$0xff]  }
 0x986   : > { %v4439_v0 = vpop.eup %4438 }
 0x987   : > { %v2198_v60 = vmul.f32 %v4439_v0, %v5143_v10  ;;  %v2197_v6 = vmul.f32 %v4439_v0, %v5140_v9  ;;  %v4383_v0 = vld [vmem:[%s5438_s22 + $0x1e0] ss:$8 sps:$4 sm:$0xff]  }
 0x989   : > { %v2213_v12 = vmul.f32 %v2209_v5, %v2198_v60  ;;  %v2212_v13 = vmul.f32 %v2205_v3, %v2197_v6  ;;  %v4391_v60 = vld [vmem:[%s5438_s22 + $0x1d4] ss:$8 sps:$4 sm:$0xff]   ;;  %v4392_v6 = vld [vmem:[%s5438_s22 + $0xc0] ss:$8 sps:$4 sm:$0xff]  }
 0x98a   : > { %v4441_v4 = vpop.eup %4440 }
 0x98b   : > { %v2200_v11 = vmul.f32 %v4441_v4, %v5153_v56  ;;  %v2199_v10 = vmul.f32 %v4441_v4, %v5150_v15  ;;  %v5207_v17 = vadd.f32 %v2224_v8, %v2213_v12  ;;  %v5211_v18 = vadd.f32 %v2220_v7, %v2212_v13  ;;  %v4326_v56 = vld [vmem:[%s5438_s22 + $0x70] ss:$8 sps:$4 sm:$0xff]   ;;  %v4394_v4 = vld [vmem:[%s5438_s22 + $0xc4] ss:$8 sps:$4 sm:$0xff]   ;;  %v4403_v12 = vld [vmem:[%s5438_s22 + $0x1b4] ss:$8 sps:$4 sm:$0xff]  }
 0x98c   : > { %v4401_v13 = vld [vmem:[%s5438_s22 + $0x1b0] ss:$8 sps:$4 sm:$0xff]  }
 0x98d   : > { %v2215_v14 = vmul.f32 %v2209_v5, %v2200_v11  ;;  %v2214_v16 = vmul.f32 %v2205_v3, %v2199_v10  ;;  %v4386_v3 = vld [vmem:[%s5438_s22 + $0xd0] ss:$8 sps:$4 sm:$0xff]   ;;  %v4400_v11 = vld [vmem:[%s5438_s22 + $0xb4] ss:$8 sps:$4 sm:$0xff]  }
 0x98e   : > { %v4389_v5 = vld [vmem:[%s5438_s22 + $0x1d0] ss:$8 sps:$4 sm:$0xff]  }
 0x98f   : > { %v5209_v9 = vadd.f32 %v2224_v8, %v2215_v14  ;;  %v5213_v19 = vadd.f32 %v2220_v7, %v2214_v16  ;;  %v4395_v7 = vld [vmem:[%s5438_s22 + $0x1c0] ss:$8 sps:$4 sm:$0xff]   ;;  %v4397_v8 = vld [vmem:[%s5438_s22 + $0x1c4] ss:$8 sps:$4 sm:$0xff]   ;;  %v4398_v10 = vld [vmem:[%s5438_s22 + $0xb0] ss:$8 sps:$4 sm:$0xff]  }
 0x990   : > { %v4406_v14 = vld [vmem:[%s5438_s22 + $0xa4] ss:$8 sps:$4 sm:$0xff]  }
 0x991   : > { %v2232_v20 = vpack.c.bf16 %v5209_v9, %v5207_v17  ;;  %v2231_v15 = vpack.c.bf16 %v5213_v19, %v5211_v18  ;;  %v4409_v16 = vld [vmem:[%s5438_s22 + $0x1a4] ss:$8 sps:$4 sm:$0xff]  }
 0x993   : > { %2671 = vmatprep.mubr.bf16.mxu1 %v2232_v20  ;;  %2714 = vmatprep.mubr.bf16.mxu0 %v2232_v20  ;;  %v4404_v20 = vld [vmem:[%s5438_s22 + $0xa0] ss:$8 sps:$4 sm:$0xff]  }
 0x994   : > { %2672 = vmatmul.mubr.bf16.vlgmr.msra.gmra.mxu1 %v2231_v15  ;;  %2715 = vmatmul.mubr.bf16.vlgmr.msra.gmra.mxu0 %v2231_v15  ;;  %v4407_v15 = vld [vmem:[%s5438_s22 + $0x1a0] ss:$8 sps:$4 sm:$0xff]  }
 0x995   : > { %3198 = vmatpush1.bf16.msra.mxu1 %v4326_v56  ;;  %3241 = vmatpush1.bf16.msra.mxu0 %v4329_v21  ;;  %v4412_v56 = vld [vmem:[%s5438_s22 + $0x94] ss:$8 sps:$4 sm:$0xff]  }
 0x996   : > { %3199 = vmatprep.subr.bf16.mxu1 %v4334_v22  ;;  %3242 = vmatprep.subr.bf16.mxu0 %v4337_v23  ;;  %v4415_v21 = vld [vmem:[%s5438_s22 + $0x194] ss:$8 sps:$4 sm:$0xff]   ;;  %v4410_v22 = vld [vmem:[%s5438_s22 + $0x90] ss:$8 sps:$4 sm:$0xff]  }
 0x997   : > { %v4413_v23 = vld [vmem:[%s5438_s22 + $0x190] ss:$8 sps:$4 sm:$0xff]  }
 0x999   : > { %3200 = vmatpush1.bf16.msra.mxu1 %v4332_v24  ;;  %3243 = vmatpush1.bf16.msra.mxu0 %v4335_v25  ;;  %v4418_v24 = vld [vmem:[%s5438_s22 + $0x84] ss:$8 sps:$4 sm:$0xff]  }
 0x99a   : > { %3201 = vmatprep.subr.bf16.mxu1 %v4340_v26  ;;  %3244 = vmatprep.subr.bf16.mxu0 %v4343_v52  ;;  %v4421_v25 = vld [vmem:[%s5438_s22 + $0x184] ss:$8 sps:$4 sm:$0xff]   ;;  %v4416_v26 = vld [vmem:[%s5438_s22 + $0x80] ss:$8 sps:$4 sm:$0xff]  }
 0x99b   : > { %v4419_v52 = vld [vmem:[%s5438_s22 + $0x180] ss:$8 sps:$4 sm:$0xff]  }
 0x99d   : > { %3202 = vmatpush1.bf16.msra.mxu1 %v4338_v27  ;;  %3245 = vmatpush1.bf16.msra.mxu0 %v4341_v46  ;;  %v2297_v27 = vld [vmem:[%s4852_s18] sm:$0xf] }
 0x99e   : > { %3203 = vmatprep.subr.bf16.mxu1 %v4346_v28  ;;  %3246 = vmatprep.subr.bf16.mxu0 %v4349_v29  ;;  %v2302_v46 = vrot.slane %v2297_v27, %v4961_v63  ;;  %v2310_v28 = vrot.slane %v2297_v27, %v999_v59  ;;  %v2306_v29 = vrot.slane %v2297_v27, %v5042_v40 }
 0x9a1   : > { %3204 = vmatpush1.bf16.msra.mxu1 %v4344_v30  ;;  %3247 = vmatpush1.bf16.msra.mxu0 %v4347_v53  ;;  %v2314_v30 = vrot.slane %v2297_v27, %v1003_v37 }
 0x9a2   : > { %3205 = vmatprep.subr.bf16.mxu1 %v4352_v31  ;;  %3248 = vmatprep.subr.bf16.mxu0 %v4355_v32 }
 0x9a5   : > { %3206 = vmatpush1.bf16.msra.mxu1 %v4350_v33  ;;  %3249 = vmatpush1.bf16.msra.mxu0 %v4353_v34 }
 0x9a6   : > { %3207 = vmatprep.subr.bf16.mxu1 %v4358_v35  ;;  %3250 = vmatprep.subr.bf16.mxu0 %v4361_v36 }
 0x9a9   : > { %3208 = vmatpush1.bf16.msra.mxu1 %v4356_v38  ;;  %3251 = vmatpush1.bf16.msra.mxu0 %v4359_v39 }
 0x9aa   : > { %3209 = vmatprep.subr.bf16.mxu1 %v4364_v41  ;;  %3252 = vmatprep.subr.bf16.mxu0 %v4367_v42 }
 0x9ad   : > { %3210 = vmatpush1.bf16.msra.mxu1 %v4362_v43  ;;  %3253 = vmatpush1.bf16.msra.mxu0 %v4365_v45 }
 0x9ae   : > { %3211 = vmatprep.subr.bf16.mxu1 %v4370_v47  ;;  %3254 = vmatprep.subr.bf16.mxu0 %v4373_v48 }
 0x9b1   : > { %3212 = vmatpush1.bf16.msra.mxu1 %v4368_v49  ;;  %3255 = vmatpush1.bf16.msra.mxu0 %v4371_v50 }
 0x9b2   : > { %3213 = vmatprep.subr.bf16.mxu1 %v4376_v51  ;;  %3256 = vmatprep.subr.bf16.mxu0 %v4379_v54 }
 0x9b5   : > { %3214 = vmatpush2.bf16.msra.mxu1 %v4374_v55  ;;  %3257 = vmatpush2.bf16.msra.mxu0 %v4377_v44 }
 0x9b6   : > { %3215 = vmatprep.subr.bf16.mxu1 %v4382_v61  ;;  %3258 = vmatprep.subr.bf16.mxu0 %v4385_v1 }
 0x9b9   : > { %3216 = vmatpush2.bf16.msra.mxu1 %v4380_v62  ;;  %3259 = vmatpush2.bf16.msra.mxu0 %v4383_v0 }
 0x9ba   : > { %3217 = vmatprep.subr.bf16.mxu1 %v4388_v2  ;;  %3260 = vmatprep.subr.bf16.mxu0 %v4391_v60 }
 0x9bd   : > { %3218 = vmatpush2.bf16.msra.mxu1 %v4386_v3  ;;  %3261 = vmatpush2.bf16.msra.mxu0 %v4389_v5 }
 0x9be   : > { %3219 = vmatprep.subr.bf16.mxu1 %v4394_v4  ;;  %3262 = vmatprep.subr.bf16.mxu0 %v4397_v8 }
 0x9c1   : > { %3220 = vmatpush2.bf16.msra.mxu1 %v4392_v6  ;;  %3263 = vmatpush2.bf16.msra.mxu0 %v4395_v7 }
 0x9c2   : > { %3221 = vmatprep.subr.bf16.mxu1 %v4400_v11  ;;  %3264 = vmatprep.subr.bf16.mxu0 %v4403_v12 }
 0x9c5   : > { %3222 = vmatpush2.bf16.msra.mxu1 %v4398_v10  ;;  %3265 = vmatpush2.bf16.msra.mxu0 %v4401_v13 }
 0x9c6   : > { %3223 = vmatprep.subr.bf16.mxu1 %v4406_v14  ;;  %3266 = vmatprep.subr.bf16.mxu0 %v4409_v16 }
 0x9c9   : > { %3224 = vmatpush2.bf16.msra.mxu1 %v4404_v20  ;;  %3267 = vmatpush2.bf16.msra.mxu0 %v4407_v15 }
 0x9ca   : > { %3225 = vmatprep.subr.bf16.mxu1 %v4412_v56  ;;  %3268 = vmatprep.subr.bf16.mxu0 %v4415_v21 }
 0x9cd   : > { %3226 = vmatpush2.bf16.msra.mxu1 %v4410_v22  ;;  %3269 = vmatpush2.bf16.msra.mxu0 %v4413_v23 }
 0x9ce   : > { %3227 = vmatprep.subr.bf16.mxu1 %v4418_v24  ;;  %3270 = vmatprep.subr.bf16.mxu0 %v4421_v25 }
 0x9d1   : > { %3228 = vmatpush2.bf16.msra.mxu1 %v4416_v26  ;;  %3271 = vmatpush2.bf16.msra.mxu0 %v4419_v52 }
 0xa54   : > { %v2673_v53 = vpop.f32.mrf.mxu1  ;;  %v2716_v31 = vpop.f32.mrf.mxu0 }
 0xa55   : > { %v5288_v32 = vadd.f32 %v2673_v53, %v2302_v46  ;;  %v5290_v33 = vadd.f32 %v2716_v31, %v2310_v28 }
 0xa56   : > { %v2675_v34 = vpop.f32.mrf.mxu1  ;;  %v2718_v35 = vpop.f32.mrf.mxu0 }
 0xa57   : > { %v2733_v36 = vmul.f32 0.044715, %v5288_v32  ;;  %v2735_v38 = vmul.f32 0.044715, %v5290_v33  ;;  %v2676_v39 = vadd.f32 %v2675_v34, %v2306_v29  ;;  %v5294_v41 = vadd.f32 %v2718_v35, %v2314_v30 }
 0xa58   : > { %v2677_v59 = vpop.f32.mrf.mxu1  ;;  %v2720_v42 = vpop.f32.mrf.mxu0 }
 0xa59   : > { %v2741_v43 = vmul.f32 %v2733_v36, %v5288_v32  ;;  %v2743_v37 = vmul.f32 %v2735_v38, %v5290_v33  ;;  %v2734_v45 = vmul.f32 0.044715, %v2676_v39  ;;  %v2736_v47 = vmul.f32 0.044715, %v5294_v41 }
 0xa5a   : > { %v2678_v48 = vadd.f32 %v2677_v59, %v2302_v46  ;;  %v5299_v49 = vadd.f32 %v2720_v42, %v2310_v28  ;;  %v2679_v50 = vpop.f32.mrf.mxu1  ;;  %v2722_v51 = vpop.f32.mrf.mxu0  ;;  %v2726_v59 = vmul.f32 0.5, %v2676_v39 }
 0xa5b   : > { %v2749_v54 = vmul.f32 %v2741_v43, %v5288_v32  ;;  %v2751_v55 = vmul.f32 %v2743_v37, %v5290_v33  ;;  %v2742_v44 = vmul.f32 %v2734_v45, %v2676_v39  ;;  %v2744_v61 = vmul.f32 %v2736_v47, %v5294_v41 }
 0xa5c   : > { %v2737_v1 = vmul.f32 0.044715, %v2678_v48  ;;  %v2739_v62 = vmul.f32 0.044715, %v5299_v49  ;;  %v2680_v0 = vadd.f32 %v2679_v50, %v2306_v29  ;;  %v2723_v2 = vadd.f32 %v2722_v51, %v2314_v30 }
 0xa5d   : > { %v2757_v60 = vadd.f32 %v2749_v54, %v5288_v32  ;;  %v2759_v3 = vadd.f32 %v2751_v55, %v5290_v33  ;;  %v2750_v5 = vmul.f32 %v2742_v44, %v2676_v39  ;;  %v2752_v6 = vmul.f32 %v2744_v61, %v5294_v41 }
 0xa5e   : > { %v2745_v4 = vmul.f32 %v2737_v1, %v2678_v48  ;;  %v2747_v7 = vmul.f32 %v2739_v62, %v5299_v49  ;;  %v2738_v8 = vmul.f32 0.044715, %v2680_v0  ;;  %v2740_v11 = vmul.f32 0.044715, %v2723_v2 }
 0xa5f   : > { %v2765_v12 = vmul.f32 0.7978846, %v2757_v60  ;;  %v2767_v10 = vmul.f32 0.7978846, %v2759_v3  ;;  %v2758_v13 = vadd.f32 %v2750_v5, %v2676_v39  ;;  %v2760_v21 = vadd.f32 %v2752_v6, %v5294_v41 }
 0xa60   : > { %v2753_v14 = vmul.f32 %v2745_v4, %v2678_v48  ;;  %v2755_v16 = vmul.f32 %v2747_v7, %v5299_v49  ;;  %v2746_v20 = vmul.f32 %v2738_v8, %v2680_v0  ;;  %v2748_v15 = vmul.f32 %v2740_v11, %v2723_v2 }
 0xa61   : > { %v2766_v56 = vmul.f32 0.7978846, %v2758_v13  ;;  %4442 = vtanh.f32 %v2765_v12  ;;  %v2768_v26 = vmul.f32 0.7978846, %v2760_v21  ;;  %v2725_v43 = vmul.f32 0.5, %v5288_v32 }
 0xa62   : > { %v2761_v22 = vadd.f32 %v2753_v14, %v2678_v48  ;;  %v2763_v23 = vadd.f32 %v2755_v16, %v5299_v49  ;;  %v2754_v24 = vmul.f32 %v2746_v20, %v2680_v0  ;;  %4444 = vtanh.f32 %v2767_v10 }
 0xa63   : > { %v2756_v25 = vmul.f32 %v2748_v15, %v2723_v2  ;;  %4446 = vtanh.f32 %v2766_v56  ;;  %v2729_v50 = vmul.f32 0.5, %v2678_v48  ;;  %v2730_v44 = vmul.f32 0.5, %v2680_v0 }
 0xa64   : > { %v2769_v52 = vmul.f32 0.7978846, %v2761_v22  ;;  %v2771_v27 = vmul.f32 0.7978846, %v2763_v23  ;;  %v2762_v46 = vadd.f32 %v2754_v24, %v2680_v0  ;;  %4448 = vtanh.f32 %v2768_v26 }
 0xa65   : > { %v2764_v28 = vadd.f32 %v2756_v25, %v2723_v2  ;;  %v2731_v1 = vmul.f32 0.5, %v5299_v49  ;;  %v2728_v60 = vmul.f32 0.5, %v5294_v41  ;;  %v2732_v3 = vmul.f32 0.5, %v2723_v2  ;;  %v2865_v41 = vld [vmem:[%s794_s26] sm:$0x3] }
 0xa66   : > { %4450 = vtanh.f32 %v2769_v52  ;;  %v2770_v29 = vmul.f32 0.7978846, %v2762_v46  ;;  %v2727_v4 = vmul.f32 0.5, %v5290_v33  ;;  %v2870_v33 = vrot.slane %v2865_v41, %v4961_v63 }
 0xa67   : > { %4452 = vtanh.f32 %v2771_v27  ;;  %v2772_v30 = vmul.f32 0.7978846, %v2764_v28  ;;  %v2874_v2 = vrot.slane %v2865_v41, %v5042_v40 }
 0xa68   : > { %4454 = vtanh.f32 %v2770_v29 }
 0xa69   : > { %4456 = vtanh.f32 %v2772_v30 }
 0xa6e   : > { %v4443_v53 = vpop.eup %4442 }
 0xa6f   : > { %v4445_v31 = vpop.eup %4444  ;;  %v2781_v51 = vadd.f32 1.0, %v4443_v53 }
 0xa70   : > { %v4447_v34 = vpop.eup %4446  ;;  %v2783_v62 = vadd.f32 1.0, %v4445_v31 }
 0xa71   : > { %v4449_v35 = vpop.eup %4448  ;;  %v2782_v42 = vadd.f32 1.0, %v4447_v34  ;;  %v2789_v11 = vmul.f32 %v2781_v51, %v2725_v43 }
 0xa72   : > { %v2784_v47 = vadd.f32 1.0, %v4449_v35  ;;  %v2791_v0 = vmul.f32 %v2783_v62, %v2727_v4 }
 0xa73   : > { %v4451_v36 = vpop.eup %4450  ;;  %v2790_v6 = vmul.f32 %v2782_v42, %v2726_v59 }
 0xa74   : > { %v4453_v38 = vpop.eup %4452  ;;  %v2785_v37 = vadd.f32 1.0, %v4451_v36  ;;  %v2792_v48 = vmul.f32 %v2784_v47, %v2728_v60 }
 0xa75   : > { %v4455_v45 = vpop.eup %4454  ;;  %v2787_v54 = vadd.f32 1.0, %v4453_v38 }
 0xa76   : > { %v4457_v55 = vpop.eup %4456  ;;  %v2786_v61 = vadd.f32 1.0, %v4455_v45  ;;  %v2793_v39 = vmul.f32 %v2785_v37, %v2729_v50 }
 0xa77   : > { %v2788_v5 = vadd.f32 1.0, %v4457_v55  ;;  %v2795_v7 = vmul.f32 %v2787_v54, %v2731_v1 }
 0xa78   : > { %v2794_v32 = vmul.f32 %v2786_v61, %v2730_v44  ;;  %v2797_v13 = vpack.c.bf16 %v2793_v39, %v2789_v11 }
 0xa79   : > { %v2796_v8 = vmul.f32 %v2788_v5, %v2732_v3  ;;  %v2799_v49 = vpack.c.bf16 %v2795_v7, %v2791_v0  ;;  %v3287_v3 = vld [vmem:[%s798_s20] sm:$0x3] }
 0xa7a   : > { %v2798_v12 = vpack.c.bf16 %v2794_v32, %v2790_v6  ;;  %v3288_v5 = vld [vmem:[%s802_s27] sm:$0x3]  ;;  %v3325_v39 = vrot.slane %v3287_v3, %v4961_v63  ;;  %v3329_v6 = vrot.slane %v3287_v3, %v5042_v40  ;;  %s5446_s27 = sld [smem:[#allocation18_spill]] (!%p3907_p5) }
 0xa7b   : > { %v2800_v10 = vpack.c.bf16 %v2796_v8, %v2792_v48  ;;  %v3340_v4 = vrot.slane %v3288_v5, %v4961_v63  ;;  %v3344_v7 = vrot.slane %v3288_v5, %v5042_v40 }
 0xa7c   : > { %3229 = vmatprep.mubr.bf16.mxu1 %v2798_v12 }
 0xa7d   : > { %3272 = vmatprep.mubr.bf16.mxu0 %v2800_v10  ;;  %3230 = vmatmul.mubr.bf16.vlgmr.msra.gmra.mxu1 %v2797_v13 }
 0xa7e   : > { %3273 = vmatmul.mubr.bf16.vlgmr.msra.gmra.mxu0 %v2799_v49 }
 0xb3d   : > { %v3231_v14 = vpop.f32.mrf.mxu1 }
 0xb3e   : > { %v3232_v16 = vadd.f32 %v3231_v14, %v2870_v33  ;;  %v3274_v20 = vpop.f32.mrf.mxu0 }
 0xb3f   : > { %v3233_v15 = vpop.f32.mrf.mxu1 }
 0xb40   : > { %v3275_v56 = vadd.f32 %v3274_v20, %v3232_v16  ;;  %v3234_v21 = vadd.f32 %v3233_v15, %v2874_v2  ;;  %v3276_v22 = vpop.f32.mrf.mxu0 }
 0xb41   : > { %v3235_v23 = vpop.f32.mrf.mxu1 }
 0xb42   : > { %v3277_v24 = vadd.f32 %v3276_v22, %v3234_v21  ;;  %v3236_v25 = vadd.f32 %v3235_v23, %v2870_v33  ;;  %v3278_v26 = vpop.f32.mrf.mxu0  ;;  %v3283_v27 = vadd.f32 %v3275_v56, %v5211_v18 }
 0xb43   : > { %v3237_v52 = vpop.f32.mrf.mxu1 }
 0xb44   : > { %v3284_v46 = vadd.f32 %v3277_v24, %v5207_v17  ;;  %v3279_v28 = vadd.f32 %v3278_v26, %v3236_v25  ;;  %v3238_v29 = vadd.f32 %v3237_v52, %v2874_v2  ;;  %v3280_v30 = vpop.f32.mrf.mxu0 }
 0xb46   : > { %v3281_v53 = vadd.f32 %v3280_v30, %v3238_v29  ;;  %v3289_v31 = vadd.f32 %v3284_v46, %v3283_v27  ;;  %v3285_v34 = vadd.f32 %v3279_v28, %v5213_v19 }
 0xb48   : > { %v3286_v35 = vadd.f32 %v3281_v53, %v5209_v9  ;;  %3290 = vadd.xlane.f32.xlu0 %v3289_v31 }
 0xb4a   : > { %v3292_v36 = vadd.f32 %v3286_v35, %v3285_v34 }
 0xb4c   : > { %3293 = vadd.xlane.f32.xlu1 %v3292_v36 }
 0xbd1   : > { %v3291_v38 = vpop.xlane.xlu0 %3290 }
 0xbd2   : > { %v3295_v59 = vmul.f32 0.00390625, %v3291_v38 }
 0xbd4   : > { %v3297_v42 = vsub.f32 %v3283_v27, %v3295_v59  ;;  %v3298_v43 = vsub.f32 %v3284_v46, %v3295_v59 }
 0xbd5   : > { %v3294_v37 = vpop.xlane.xlu1 %3293 }
 0xbd6   : > { %v3296_v18 = vmul.f32 0.00390625, %v3294_v37  ;;  %v3301_v45 = vmul.f32 %v3297_v42, %v3297_v42  ;;  %v3302_v17 = vmul.f32 %v3298_v43, %v3298_v43 }
 0xbd8   : > { %v3299_v47 = vsub.f32 %v3285_v34, %v3296_v18  ;;  %v3300_v50 = vsub.f32 %v3286_v35, %v3296_v18  ;;  %v3305_v51 = vadd.f32 %v3302_v17, %v3301_v45 }
 0xbda   : > { %3306 = vadd.xlane.f32.xlu0 %v3305_v51  ;;  %v3303_v19 = vmul.f32 %v3299_v47, %v3299_v47  ;;  %v3304_v54 = vmul.f32 %v3300_v50, %v3300_v50 }
 0xbdc   : > { %v3308_v9 = vadd.f32 %v3304_v54, %v3303_v19 }
 0xbde   : > { %3309 = vadd.xlane.f32.xlu1 %v3308_v9 }
 0xc63   : > { %v3307_v55 = vpop.xlane.xlu0 %3306 }
 0xc64   : > { %v3311_v44 = vmul.f32 0.00390625, %v3307_v55 }
 0xc66   : > { %v3313_v61 = vadd.f32 1e-12, %v3311_v44 }
 0xc67   : > { %v3310_v1 = vpop.xlane.xlu1 %3309 }
 0xc68   : > { %4458 = vrsqrt.f32 %v3313_v61  ;;  %v3312_v62 = vmul.f32 0.00390625, %v3310_v1 }
 0xc6a   : > { %v3314_v60 = vadd.f32 1e-12, %v3312_v62 }
 0xc6c   : > { %4460 = vrsqrt.f32 %v3314_v60 }
 0xc75   : > { %v4459_v32 = vpop.eup %4458 }
 0xc76   : > { %v3317_v48 = vmul.f32 %v4459_v32, %v3297_v42  ;;  %v3318_v8 = vmul.f32 %v4459_v32, %v3298_v43 }
 0xc78   : > { %v3332_v11 = vmul.f32 %v3325_v39, %v3317_v48  ;;  %v3333_v12 = vmul.f32 %v3329_v6, %v3318_v8 }
 0xc79   : > { %v4461_v0 = vpop.eup %4460 }
 0xc7a   : > { %v3347_v10 = vadd.f32 %v3340_v4, %v3332_v11  ;;  %v3348_v13 = vadd.f32 %v3344_v7, %v3333_v12  ;;  %v3319_v49 = vmul.f32 %v4461_v0, %v3299_v47  ;;  %v3320_v41 = vmul.f32 %v4461_v0, %v3300_v50 }
 0xc7c   : > { %3351 = vst [vmem:[#allocation2 + $0x10] sm:$0xff] %v3347_v10  ;;  %3352 = vst [vmem:[#allocation2] sm:$0xff] %v3348_v13  ;;  %v3334_v33 = vmul.f32 %v3325_v39, %v3319_v49  ;;  %v3335_v2 = vmul.f32 %v3329_v6, %v3320_v41  ;;  %3358 = sbr.rel (%p3907_p5) target bundleno = 3213 (0xc8d), region = 100 }
 0xc7e   : > { %v3349_v14 = vadd.f32 %v3340_v4, %v3334_v33  ;;  %v3350_v16 = vadd.f32 %v3344_v7, %v3335_v2 }
 0xc80   : > { %3353 = vst [vmem:[#allocation2 + $0x18] sm:$0xff] %v3349_v14  ;;  %3354 = vst [vmem:[#allocation2 + $0x8] sm:$0xff] %v3350_v16 }
 0xc81   : > { %v4601_v63 = vmov 1966171168   ;;  %v3361_v20 = vcombine.low %v3347_v10, %v3348_v13  ;;  %vm3379_vm2 = vcmp.lt.s32.totalorder %v989_v57, 256 }
 0xc82   : > { %v3363_v40 = vunpack.c.l.s4 %v4601_v63 }
 0xc84   : > { %v3364_v15 = vunpack.c.0.s8 %v3363_v40 }
 0xc86   : > { %v3367_v56 = vsub.s32 %v3364_v15, %v4951_v58 }
 0xc88   : > { %v3368_v21 = vrot.slane %v3361_v20, %v3367_v56 }
 0xc8a   : > { %v3375_v22 = vrot.slane %v3368_v21, %v3367_v56 }
 0xc8c   : > { %3381 = vst.msk [vmem:[%s5446_s27] sm:$0x3] %vm3379_vm2, %v3375_v22 }
 0xc8d PF: > { %s5447_s11 = sld [smem:[#allocation13_spill]] }
 0xc8e   : > { %s5448_s21 = sld [smem:[#allocation9_spill]] }
 0xc8f   : > { %s5449_s22 = sld [smem:[#allocation10_spill]] }
 0xc90   : > { %s5450_s23 = sld [smem:[#allocation16_spill]] }
 0xc91   : > { %s5451_s24 = sld [smem:[#allocation11_spill]] }
 0xc92   : > { %s5452_s25 = sld [smem:[#allocation12_spill]] }
 0xc93   : > { %s32_s28 = sadd.s32 1, %s5447_s11   ;;  %s5453_s26 = sld [smem:[#allocation14_spill]] }
 0xc94   : > { %p29_p6 = scmp.ge.s32.totalorder %s32_s28, 6   ;;  %s5454_s27 = sld [smem:[#allocation15_spill]] }
 0xc96   :  { %31 = sbr.rel (!%p29_p6) target bundleno = 23 (0x17), region = 181 }
 0xc9b   :  { %3401 = vsyncpa [#allocation4], 1 }
 0xc9c   :  { %3403 = vsyncpa [#allocation4 + $0x1], 1 }
 0xc9d   :  { %3404 = vsyncpa [#allocation6], 1 }
 0xc9e   :  { %3406 = vsyncpa [#allocation6 + $0x1], 1 }

</bundles_post_ra>
